<compile_context>
chip_gen: v7x
topology: tpu7x:2x2x1
jax: 0.10.0
libtpu: 0.0.40
codegen_flags: <defaults>
</compile_context>

<pallas_src>
import functools

import jax
import jax.numpy as jnp
from jax.experimental import pallas as pl
from jax.experimental.pallas import tpu as pltpu


def _make_mfm_kernel(H, W, KH, KW):
    """Builds the per-image fused conv3x3 + bias + MFM-max kernel."""
    HW = H * W

    def kernel(xp_ref, wa_ref, wb_ref, ba_ref, bb_ref, o_ref):
        # xp_ref: (1, H+KH-1, W+KW-1, C)  zero-padded NHWC tile (one image)
        # wa_ref/wb_ref: (KH, KW, C, Cop) per-tap weights for the two halves
        # ba_ref/bb_ref: (1, Cop)         biases for the two halves (f32)
        # o_ref: (1, Cop, H*W)            lane-dense channel-major output
        cop = o_ref.shape[1]
        cin = xp_ref.shape[-1]

        acc_a = jnp.zeros((HW, cop), jnp.float32)
        acc_b = jnp.zeros((HW, cop), jnp.float32)

        # 3x3 conv as 9 shift-and-matmul taps accumulated in f32 on the MXU.
        # The shifted window is read straight from the VMEM tile (no HBM im2col).
        for dh in range(KH):
            for dw in range(KW):
                xs = xp_ref[0, dh:dh + H, dw:dw + W, :].reshape(HW, cin)
                w_a = wa_ref[dh, dw]                       # (C, Cop)
                w_b = wb_ref[dh, dw]                       # (C, Cop)
                acc_a += jnp.dot(xs, w_a, preferred_element_type=jnp.float32)
                acc_b += jnp.dot(xs, w_b, preferred_element_type=jnp.float32)

        out = jnp.maximum(acc_a + ba_ref[...], acc_b + bb_ref[...])   # (HW, Cop)
        # Transpose (HW, Cop) -> (Cop, HW): (8,128)-aligned XLU transpose; the
        # store is unmasked/lane-dense and the result is already channel-major,
        # folding the NHWC->NCHW transpose into the kernel.
        o_ref[0] = jnp.transpose(out, (1, 0)).astype(o_ref.dtype)

    return kernel


@functools.partial(jax.jit, static_argnames=("out_channels", "compute_dtype"))
def mfm_forward(x_nchw, weight, bias, *, out_channels,
                compute_dtype=jnp.float32):
    """MFM forward.  x_nchw: (N, C, H, W).  weight: (2*Co, C, KH, KW).  bias: (2*Co,)."""
    N, C, H, W = x_nchw.shape
    two_co, _, KH, KW = weight.shape
    assert two_co == 2 * out_channels
    co = out_channels
    cop = ((co + 127) // 128) * 128          # pad channel half up to lane width
    HW = H * W
    ph, pw = KH // 2, KW // 2                # 'same' padding (stride 1)
    Hp, Wp = H + 2 * ph, W + 2 * pw

    # ---- wrapper-side layout prep (cheap, single XLA pass each) ------------
    # NOTE: in a full network you would keep NHWC as the interchange layout so
    # this input transpose disappears; the output side already needs none.
    x_nhwc = jnp.transpose(x_nchw, (0, 2, 3, 1)).astype(compute_dtype)
    xp = jnp.pad(x_nhwc, ((0, 0), (ph, ph), (pw, pw), (0, 0)))   # (N,Hp,Wp,C)

    w = jnp.transpose(weight, (2, 3, 1, 0))                      # (KH,KW,C,2Co)
    pad4 = ((0, 0), (0, 0), (0, 0), (0, cop - co))
    wa = jnp.pad(w[..., :co], pad4).astype(compute_dtype)        # (KH,KW,C,Cop)
    wb = jnp.pad(w[..., co:], pad4).astype(compute_dtype)
    ba = jnp.pad(bias[:co], (0, cop - co)).reshape(1, cop).astype(jnp.float32)
    bb = jnp.pad(bias[co:], (0, cop - co)).reshape(1, cop).astype(jnp.float32)

    kernel = _make_mfm_kernel(H, W, KH, KW)

    itemsize = jnp.dtype(compute_dtype).itemsize
    out_itemsize = jnp.dtype(x_nchw.dtype).itemsize
    flops = 2 * N * HW * (C * KH * KW) * (2 * co)
    bytes_accessed = (N * Hp * Wp * C * itemsize
                      + 2 * KH * KW * C * cop * itemsize
                      + N * cop * HW * out_itemsize)

    out_pad = pl.pallas_call(
        kernel,
        out_shape=jax.ShapeDtypeStruct((N, cop, HW), x_nchw.dtype),
        grid_spec=pltpu.PrefetchScalarGridSpec(
            num_scalar_prefetch=0,
            grid=(N,),
            in_specs=[
                pl.BlockSpec((1, Hp, Wp, C), lambda n: (n, 0, 0, 0)),   # image
                pl.BlockSpec((KH, KW, C, cop), lambda n: (0, 0, 0, 0)),  # w half a
                pl.BlockSpec((KH, KW, C, cop), lambda n: (0, 0, 0, 0)),  # w half b
                pl.BlockSpec((1, cop), lambda n: (0, 0)),                # bias a
                pl.BlockSpec((1, cop), lambda n: (0, 0)),                # bias b
            ],
            out_specs=pl.BlockSpec((1, cop, HW), lambda n: (n, 0, 0)),
        ),
        compiler_params=pltpu.CompilerParams(
            dimension_semantics=("parallel",),       # batch axis: both v7x TCs
            vmem_limit_bytes=32 * 1024 * 1024,       # safe on v5e/v6e/v7x
        ),
        cost_estimate=pl.CostEstimate(
            flops=flops, transcendentals=0, bytes_accessed=bytes_accessed),
    )(xp, wa, wb, ba, bb)

    # Output is already channel-major; just drop the lane padding and reshape.
    return out_pad[:, :co, :].reshape(N, co, H, W)                # (N,Co,H,W)


def _reference(x_nchw, weight, bias, out_channels):
    y = jax.lax.conv_general_dilated(
        x_nchw, weight, window_strides=(1, 1), padding=((1, 1), (1, 1)),
        dimension_numbers=("NCHW", "OIHW", "NCHW"))
    y = y + bias.reshape(1, -1, 1, 1)
    return jnp.maximum(y[:, :out_channels], y[:, out_channels:])


if __name__ == "__main__":
    # Small shapes consistent with the module: batch=2, in_ch=4, spatial=16x16.
    N, C, H, W = 2, 4, 16, 16
    out_channels = 8
    KH = KW = 3

    key = jax.random.PRNGKey(0)
    kx, kw, kb = jax.random.split(key, 3)

    x = jax.random.normal(kx, (N, C, H, W), dtype=jnp.float32)
    fan_in = C * KH * KW
    weight = jax.random.normal(kw, (2 * out_channels, C, KH, KW),
                               dtype=jnp.float32) * (1.0 / fan_in) ** 0.5
    bias = jax.random.normal(kb, (2 * out_channels,), dtype=jnp.float32) * 0.01

    ref = _reference(x, weight, bias, out_channels)

    # f32 compute path: strict check.
    out = mfm_forward(x, weight, bias, out_channels=out_channels,
                      compute_dtype=jnp.float32)
    out = jax.block_until_ready(out)
    assert out.shape == (N, out_channels, H, W)
    assert jnp.allclose(out, ref, atol=1e-4, rtol=1e-4), "f32 mismatch vs reference"

    # bf16 compute path (v6e/v7x MXU-friendly, f32 accumulation): loose check.
    out_bf16 = mfm_forward(x, weight, bias, out_channels=out_channels,
                           compute_dtype=jnp.bfloat16)
    out_bf16 = jax.block_until_ready(out_bf16)
    assert jnp.allclose(out_bf16, ref, atol=5e-2, rtol=5e-2), "bf16 mismatch vs reference"

    print("KERNEL_OK")
</pallas_src>

<mosaic_0001>
module attributes {stable_mosaic.version = 11 : i64} {
  func.func @kernel(%arg0: i32, %arg1: memref<1x18x18x4xf32, #tpu.memory_space<vmem>>, %arg2: memref<3x3x4x128xf32, #tpu.memory_space<vmem>>, %arg3: memref<3x3x4x128xf32, #tpu.memory_space<vmem>>, %arg4: memref<1x128xf32, #tpu.memory_space<vmem>>, %arg5: memref<1x128xf32, #tpu.memory_space<vmem>>, %arg6: memref<1x128x256xf32, #tpu.memory_space<vmem>>) attributes {dimension_semantics = [#tpu.dimension_semantics<parallel>], iteration_bounds = array<i64: 2>, scalar_prefetch = 0 : i64, scratch_operands = 0 : i64, tpu.core_type = #tpu.core_type<tc>, window_params = [{transform_indices = @transform_0, window_bounds = array<i64: 1, 18, 18, 4>}, {pipeline_mode = #tpu.pipeline_mode<synchronous>, transform_indices = @transform_1, window_bounds = array<i64: 3, 3, 4, 128>}, {pipeline_mode = #tpu.pipeline_mode<synchronous>, transform_indices = @transform_2, window_bounds = array<i64: 3, 3, 4, 128>}, {pipeline_mode = #tpu.pipeline_mode<synchronous>, transform_indices = @transform_3, window_bounds = array<i64: 1, 128>}, {pipeline_mode = #tpu.pipeline_mode<synchronous>, transform_indices = @transform_4, window_bounds = array<i64: 1, 128>}, {transform_indices = @transform_5, window_bounds = array<i64: 1, 128, 256>}]} {
    %cst = arith.constant 0.000000e+00 : f32
    %0 = vector.broadcast %cst : f32 to vector<256x128xf32>
    %cst_0 = arith.constant 0.000000e+00 : f32
    %1 = vector.broadcast %cst_0 : f32 to vector<256x128xf32>
    %c0 = arith.constant 0 : index
    %c0_1 = arith.constant 0 : index
    %c0_2 = arith.constant 0 : index
    %c0_3 = arith.constant 0 : index
    %2 = vector.load %arg1[%c0, %c0_1, %c0_2, %c0_3] : memref<1x18x18x4xf32, #tpu.memory_space<vmem>>, vector<1x16x16x4xf32>
    %3 = vector.shape_cast %2 : vector<1x16x16x4xf32> to vector<16x16x4xf32>
    %4 = vector.shape_cast %3 : vector<16x16x4xf32> to vector<256x4xf32>
    %c0_4 = arith.constant 0 : index
    %c0_5 = arith.constant 0 : index
    %c0_6 = arith.constant 0 : index
    %c0_7 = arith.constant 0 : index
    %5 = vector.load %arg2[%c0_4, %c0_5, %c0_6, %c0_7] : memref<3x3x4x128xf32, #tpu.memory_space<vmem>>, vector<1x1x4x128xf32>
    %6 = vector.shape_cast %5 : vector<1x1x4x128xf32> to vector<4x128xf32>
    %c0_8 = arith.constant 0 : index
    %c0_9 = arith.constant 0 : index
    %c0_10 = arith.constant 0 : index
    %c0_11 = arith.constant 0 : index
    %7 = vector.load %arg3[%c0_8, %c0_9, %c0_10, %c0_11] : memref<3x3x4x128xf32, #tpu.memory_space<vmem>>, vector<1x1x4x128xf32>
    %8 = vector.shape_cast %7 : vector<1x1x4x128xf32> to vector<4x128xf32>
    %cst_12 = arith.constant dense<0.000000e+00> : vector<256x128xf32>
    %9 = tpu.matmul %4, %6, %cst_12 {dimension_numbers = #tpu.dot_dimension_numbers<[1], [0], [0], [1], [0, 0, 1, 1], [], []>} : vector<256x4xf32>, vector<4x128xf32>, vector<256x128xf32> -> vector<256x128xf32>
    %10 = arith.addf %0, %9 : vector<256x128xf32>
    %cst_13 = arith.constant dense<0.000000e+00> : vector<256x128xf32>
    %11 = tpu.matmul %4, %8, %cst_13 {dimension_numbers = #tpu.dot_dimension_numbers<[1], [0], [0], [1], [0, 0, 1, 1], [], []>} : vector<256x4xf32>, vector<4x128xf32>, vector<256x128xf32> -> vector<256x128xf32>
    %12 = arith.addf %1, %11 : vector<256x128xf32>
    %c0_14 = arith.constant 0 : index
    %c0_15 = arith.constant 0 : index
    %c1 = arith.constant 1 : index
    %c0_16 = arith.constant 0 : index
    %13 = vector.load %arg1[%c0_14, %c0_15, %c1, %c0_16] : memref<1x18x18x4xf32, #tpu.memory_space<vmem>>, vector<1x16x16x4xf32>
    %14 = vector.shape_cast %13 : vector<1x16x16x4xf32> to vector<16x16x4xf32>
    %15 = vector.shape_cast %14 : vector<16x16x4xf32> to vector<256x4xf32>
    %c0_17 = arith.constant 0 : index
    %c1_18 = arith.constant 1 : index
    %c0_19 = arith.constant 0 : index
    %c0_20 = arith.constant 0 : index
    %16 = vector.load %arg2[%c0_17, %c1_18, %c0_19, %c0_20] : memref<3x3x4x128xf32, #tpu.memory_space<vmem>>, vector<1x1x4x128xf32>
    %17 = vector.shape_cast %16 : vector<1x1x4x128xf32> to vector<4x128xf32>
    %c0_21 = arith.constant 0 : index
    %c1_22 = arith.constant 1 : index
    %c0_23 = arith.constant 0 : index
    %c0_24 = arith.constant 0 : index
    %18 = vector.load %arg3[%c0_21, %c1_22, %c0_23, %c0_24] : memref<3x3x4x128xf32, #tpu.memory_space<vmem>>, vector<1x1x4x128xf32>
    %19 = vector.shape_cast %18 : vector<1x1x4x128xf32> to vector<4x128xf32>
    %cst_25 = arith.constant dense<0.000000e+00> : vector<256x128xf32>
    %20 = tpu.matmul %15, %17, %cst_25 {dimension_numbers = #tpu.dot_dimension_numbers<[1], [0], [0], [1], [0, 0, 1, 1], [], []>} : vector<256x4xf32>, vector<4x128xf32>, vector<256x128xf32> -> vector<256x128xf32>
    %21 = arith.addf %10, %20 : vector<256x128xf32>
    %cst_26 = arith.constant dense<0.000000e+00> : vector<256x128xf32>
    %22 = tpu.matmul %15, %19, %cst_26 {dimension_numbers = #tpu.dot_dimension_numbers<[1], [0], [0], [1], [0, 0, 1, 1], [], []>} : vector<256x4xf32>, vector<4x128xf32>, vector<256x128xf32> -> vector<256x128xf32>
    %23 = arith.addf %12, %22 : vector<256x128xf32>
    %c0_27 = arith.constant 0 : index
    %c0_28 = arith.constant 0 : index
    %c2 = arith.constant 2 : index
    %c0_29 = arith.constant 0 : index
    %24 = vector.load %arg1[%c0_27, %c0_28, %c2, %c0_29] : memref<1x18x18x4xf32, #tpu.memory_space<vmem>>, vector<1x16x16x4xf32>
    %25 = vector.shape_cast %24 : vector<1x16x16x4xf32> to vector<16x16x4xf32>
    %26 = vector.shape_cast %25 : vector<16x16x4xf32> to vector<256x4xf32>
    %c0_30 = arith.constant 0 : index
    %c2_31 = arith.constant 2 : index
    %c0_32 = arith.constant 0 : index
    %c0_33 = arith.constant 0 : index
    %27 = vector.load %arg2[%c0_30, %c2_31, %c0_32, %c0_33] : memref<3x3x4x128xf32, #tpu.memory_space<vmem>>, vector<1x1x4x128xf32>
    %28 = vector.shape_cast %27 : vector<1x1x4x128xf32> to vector<4x128xf32>
    %c0_34 = arith.constant 0 : index
    %c2_35 = arith.constant 2 : index
    %c0_36 = arith.constant 0 : index
    %c0_37 = arith.constant 0 : index
    %29 = vector.load %arg3[%c0_34, %c2_35, %c0_36, %c0_37] : memref<3x3x4x128xf32, #tpu.memory_space<vmem>>, vector<1x1x4x128xf32>
    %30 = vector.shape_cast %29 : vector<1x1x4x128xf32> to vector<4x128xf32>
    %cst_38 = arith.constant dense<0.000000e+00> : vector<256x128xf32>
    %31 = tpu.matmul %26, %28, %cst_38 {dimension_numbers = #tpu.dot_dimension_numbers<[1], [0], [0], [1], [0, 0, 1, 1], [], []>} : vector<256x4xf32>, vector<4x128xf32>, vector<256x128xf32> -> vector<256x128xf32>
    %32 = arith.addf %21, %31 : vector<256x128xf32>
    %cst_39 = arith.constant dense<0.000000e+00> : vector<256x128xf32>
    %33 = tpu.matmul %26, %30, %cst_39 {dimension_numbers = #tpu.dot_dimension_numbers<[1], [0], [0], [1], [0, 0, 1, 1], [], []>} : vector<256x4xf32>, vector<4x128xf32>, vector<256x128xf32> -> vector<256x128xf32>
    %34 = arith.addf %23, %33 : vector<256x128xf32>
    %c0_40 = arith.constant 0 : index
    %c1_41 = arith.constant 1 : index
    %c0_42 = arith.constant 0 : index
    %c0_43 = arith.constant 0 : index
    %35 = vector.load %arg1[%c0_40, %c1_41, %c0_42, %c0_43] : memref<1x18x18x4xf32, #tpu.memory_space<vmem>>, vector<1x16x16x4xf32>
    %36 = vector.shape_cast %35 : vector<1x16x16x4xf32> to vector<16x16x4xf32>
    %37 = vector.shape_cast %36 : vector<16x16x4xf32> to vector<256x4xf32>
    %c1_44 = arith.constant 1 : index
    %c0_45 = arith.constant 0 : index
    %c0_46 = arith.constant 0 : index
    %c0_47 = arith.constant 0 : index
    %38 = vector.load %arg2[%c1_44, %c0_45, %c0_46, %c0_47] : memref<3x3x4x128xf32, #tpu.memory_space<vmem>>, vector<1x1x4x128xf32>
    %39 = vector.shape_cast %38 : vector<1x1x4x128xf32> to vector<4x128xf32>
    %c1_48 = arith.constant 1 : index
    %c0_49 = arith.constant 0 : index
    %c0_50 = arith.constant 0 : index
    %c0_51 = arith.constant 0 : index
    %40 = vector.load %arg3[%c1_48, %c0_49, %c0_50, %c0_51] : memref<3x3x4x128xf32, #tpu.memory_space<vmem>>, vector<1x1x4x128xf32>
    %41 = vector.shape_cast %40 : vector<1x1x4x128xf32> to vector<4x128xf32>
    %cst_52 = arith.constant dense<0.000000e+00> : vector<256x128xf32>
    %42 = tpu.matmul %37, %39, %cst_52 {dimension_numbers = #tpu.dot_dimension_numbers<[1], [0], [0], [1], [0, 0, 1, 1], [], []>} : vector<256x4xf32>, vector<4x128xf32>, vector<256x128xf32> -> vector<256x128xf32>
    %43 = arith.addf %32, %42 : vector<256x128xf32>
    %cst_53 = arith.constant dense<0.000000e+00> : vector<256x128xf32>
    %44 = tpu.matmul %37, %41, %cst_53 {dimension_numbers = #tpu.dot_dimension_numbers<[1], [0], [0], [1], [0, 0, 1, 1], [], []>} : vector<256x4xf32>, vector<4x128xf32>, vector<256x128xf32> -> vector<256x128xf32>
    %45 = arith.addf %34, %44 : vector<256x128xf32>
    %c0_54 = arith.constant 0 : index
    %c1_55 = arith.constant 1 : index
    %c1_56 = arith.constant 1 : index
    %c0_57 = arith.constant 0 : index
    %46 = vector.load %arg1[%c0_54, %c1_55, %c1_56, %c0_57] : memref<1x18x18x4xf32, #tpu.memory_space<vmem>>, vector<1x16x16x4xf32>
    %47 = vector.shape_cast %46 : vector<1x16x16x4xf32> to vector<16x16x4xf32>
    %48 = vector.shape_cast %47 : vector<16x16x4xf32> to vector<256x4xf32>
    %c1_58 = arith.constant 1 : index
    %c1_59 = arith.constant 1 : index
    %c0_60 = arith.constant 0 : index
    %c0_61 = arith.constant 0 : index
    %49 = vector.load %arg2[%c1_58, %c1_59, %c0_60, %c0_61] : memref<3x3x4x128xf32, #tpu.memory_space<vmem>>, vector<1x1x4x128xf32>
    %50 = vector.shape_cast %49 : vector<1x1x4x128xf32> to vector<4x128xf32>
    %c1_62 = arith.constant 1 : index
    %c1_63 = arith.constant 1 : index
    %c0_64 = arith.constant 0 : index
    %c0_65 = arith.constant 0 : index
    %51 = vector.load %arg3[%c1_62, %c1_63, %c0_64, %c0_65] : memref<3x3x4x128xf32, #tpu.memory_space<vmem>>, vector<1x1x4x128xf32>
    %52 = vector.shape_cast %51 : vector<1x1x4x128xf32> to vector<4x128xf32>
    %cst_66 = arith.constant dense<0.000000e+00> : vector<256x128xf32>
    %53 = tpu.matmul %48, %50, %cst_66 {dimension_numbers = #tpu.dot_dimension_numbers<[1], [0], [0], [1], [0, 0, 1, 1], [], []>} : vector<256x4xf32>, vector<4x128xf32>, vector<256x128xf32> -> vector<256x128xf32>
    %54 = arith.addf %43, %53 : vector<256x128xf32>
    %cst_67 = arith.constant dense<0.000000e+00> : vector<256x128xf32>
    %55 = tpu.matmul %48, %52, %cst_67 {dimension_numbers = #tpu.dot_dimension_numbers<[1], [0], [0], [1], [0, 0, 1, 1], [], []>} : vector<256x4xf32>, vector<4x128xf32>, vector<256x128xf32> -> vector<256x128xf32>
    %56 = arith.addf %45, %55 : vector<256x128xf32>
    %c0_68 = arith.constant 0 : index
    %c1_69 = arith.constant 1 : index
    %c2_70 = arith.constant 2 : index
    %c0_71 = arith.constant 0 : index
    %57 = vector.load %arg1[%c0_68, %c1_69, %c2_70, %c0_71] : memref<1x18x18x4xf32, #tpu.memory_space<vmem>>, vector<1x16x16x4xf32>
    %58 = vector.shape_cast %57 : vector<1x16x16x4xf32> to vector<16x16x4xf32>
    %59 = vector.shape_cast %58 : vector<16x16x4xf32> to vector<256x4xf32>
    %c1_72 = arith.constant 1 : index
    %c2_73 = arith.constant 2 : index
    %c0_74 = arith.constant 0 : index
    %c0_75 = arith.constant 0 : index
    %60 = vector.load %arg2[%c1_72, %c2_73, %c0_74, %c0_75] : memref<3x3x4x128xf32, #tpu.memory_space<vmem>>, vector<1x1x4x128xf32>
    %61 = vector.shape_cast %60 : vector<1x1x4x128xf32> to vector<4x128xf32>
    %c1_76 = arith.constant 1 : index
    %c2_77 = arith.constant 2 : index
    %c0_78 = arith.constant 0 : index
    %c0_79 = arith.constant 0 : index
    %62 = vector.load %arg3[%c1_76, %c2_77, %c0_78, %c0_79] : memref<3x3x4x128xf32, #tpu.memory_space<vmem>>, vector<1x1x4x128xf32>
    %63 = vector.shape_cast %62 : vector<1x1x4x128xf32> to vector<4x128xf32>
    %cst_80 = arith.constant dense<0.000000e+00> : vector<256x128xf32>
    %64 = tpu.matmul %59, %61, %cst_80 {dimension_numbers = #tpu.dot_dimension_numbers<[1], [0], [0], [1], [0, 0, 1, 1], [], []>} : vector<256x4xf32>, vector<4x128xf32>, vector<256x128xf32> -> vector<256x128xf32>
    %65 = arith.addf %54, %64 : vector<256x128xf32>
    %cst_81 = arith.constant dense<0.000000e+00> : vector<256x128xf32>
    %66 = tpu.matmul %59, %63, %cst_81 {dimension_numbers = #tpu.dot_dimension_numbers<[1], [0], [0], [1], [0, 0, 1, 1], [], []>} : vector<256x4xf32>, vector<4x128xf32>, vector<256x128xf32> -> vector<256x128xf32>
    %67 = arith.addf %56, %66 : vector<256x128xf32>
    %c0_82 = arith.constant 0 : index
    %c2_83 = arith.constant 2 : index
    %c0_84 = arith.constant 0 : index
    %c0_85 = arith.constant 0 : index
    %68 = vector.load %arg1[%c0_82, %c2_83, %c0_84, %c0_85] : memref<1x18x18x4xf32, #tpu.memory_space<vmem>>, vector<1x16x16x4xf32>
    %69 = vector.shape_cast %68 : vector<1x16x16x4xf32> to vector<16x16x4xf32>
    %70 = vector.shape_cast %69 : vector<16x16x4xf32> to vector<256x4xf32>
    %c2_86 = arith.constant 2 : index
    %c0_87 = arith.constant 0 : index
    %c0_88 = arith.constant 0 : index
    %c0_89 = arith.constant 0 : index
    %71 = vector.load %arg2[%c2_86, %c0_87, %c0_88, %c0_89] : memref<3x3x4x128xf32, #tpu.memory_space<vmem>>, vector<1x1x4x128xf32>
    %72 = vector.shape_cast %71 : vector<1x1x4x128xf32> to vector<4x128xf32>
    %c2_90 = arith.constant 2 : index
    %c0_91 = arith.constant 0 : index
    %c0_92 = arith.constant 0 : index
    %c0_93 = arith.constant 0 : index
    %73 = vector.load %arg3[%c2_90, %c0_91, %c0_92, %c0_93] : memref<3x3x4x128xf32, #tpu.memory_space<vmem>>, vector<1x1x4x128xf32>
    %74 = vector.shape_cast %73 : vector<1x1x4x128xf32> to vector<4x128xf32>
    %cst_94 = arith.constant dense<0.000000e+00> : vector<256x128xf32>
    %75 = tpu.matmul %70, %72, %cst_94 {dimension_numbers = #tpu.dot_dimension_numbers<[1], [0], [0], [1], [0, 0, 1, 1], [], []>} : vector<256x4xf32>, vector<4x128xf32>, vector<256x128xf32> -> vector<256x128xf32>
    %76 = arith.addf %65, %75 : vector<256x128xf32>
    %cst_95 = arith.constant dense<0.000000e+00> : vector<256x128xf32>
    %77 = tpu.matmul %70, %74, %cst_95 {dimension_numbers = #tpu.dot_dimension_numbers<[1], [0], [0], [1], [0, 0, 1, 1], [], []>} : vector<256x4xf32>, vector<4x128xf32>, vector<256x128xf32> -> vector<256x128xf32>
    %78 = arith.addf %67, %77 : vector<256x128xf32>
    %c0_96 = arith.constant 0 : index
    %c2_97 = arith.constant 2 : index
    %c1_98 = arith.constant 1 : index
    %c0_99 = arith.constant 0 : index
    %79 = vector.load %arg1[%c0_96, %c2_97, %c1_98, %c0_99] : memref<1x18x18x4xf32, #tpu.memory_space<vmem>>, vector<1x16x16x4xf32>
    %80 = vector.shape_cast %79 : vector<1x16x16x4xf32> to vector<16x16x4xf32>
    %81 = vector.shape_cast %80 : vector<16x16x4xf32> to vector<256x4xf32>
    %c2_100 = arith.constant 2 : index
    %c1_101 = arith.constant 1 : index
    %c0_102 = arith.constant 0 : index
    %c0_103 = arith.constant 0 : index
    %82 = vector.load %arg2[%c2_100, %c1_101, %c0_102, %c0_103] : memref<3x3x4x128xf32, #tpu.memory_space<vmem>>, vector<1x1x4x128xf32>
    %83 = vector.shape_cast %82 : vector<1x1x4x128xf32> to vector<4x128xf32>
    %c2_104 = arith.constant 2 : index
    %c1_105 = arith.constant 1 : index
    %c0_106 = arith.constant 0 : index
    %c0_107 = arith.constant 0 : index
    %84 = vector.load %arg3[%c2_104, %c1_105, %c0_106, %c0_107] : memref<3x3x4x128xf32, #tpu.memory_space<vmem>>, vector<1x1x4x128xf32>
    %85 = vector.shape_cast %84 : vector<1x1x4x128xf32> to vector<4x128xf32>
    %cst_108 = arith.constant dense<0.000000e+00> : vector<256x128xf32>
    %86 = tpu.matmul %81, %83, %cst_108 {dimension_numbers = #tpu.dot_dimension_numbers<[1], [0], [0], [1], [0, 0, 1, 1], [], []>} : vector<256x4xf32>, vector<4x128xf32>, vector<256x128xf32> -> vector<256x128xf32>
    %87 = arith.addf %76, %86 : vector<256x128xf32>
    %cst_109 = arith.constant dense<0.000000e+00> : vector<256x128xf32>
    %88 = tpu.matmul %81, %85, %cst_109 {dimension_numbers = #tpu.dot_dimension_numbers<[1], [0], [0], [1], [0, 0, 1, 1], [], []>} : vector<256x4xf32>, vector<4x128xf32>, vector<256x128xf32> -> vector<256x128xf32>
    %89 = arith.addf %78, %88 : vector<256x128xf32>
    %c0_110 = arith.constant 0 : index
    %c2_111 = arith.constant 2 : index
    %c2_112 = arith.constant 2 : index
    %c0_113 = arith.constant 0 : index
    %90 = vector.load %arg1[%c0_110, %c2_111, %c2_112, %c0_113] : memref<1x18x18x4xf32, #tpu.memory_space<vmem>>, vector<1x16x16x4xf32>
    %91 = vector.shape_cast %90 : vector<1x16x16x4xf32> to vector<16x16x4xf32>
    %92 = vector.shape_cast %91 : vector<16x16x4xf32> to vector<256x4xf32>
    %c2_114 = arith.constant 2 : index
    %c2_115 = arith.constant 2 : index
    %c0_116 = arith.constant 0 : index
    %c0_117 = arith.constant 0 : index
    %93 = vector.load %arg2[%c2_114, %c2_115, %c0_116, %c0_117] : memref<3x3x4x128xf32, #tpu.memory_space<vmem>>, vector<1x1x4x128xf32>
    %94 = vector.shape_cast %93 : vector<1x1x4x128xf32> to vector<4x128xf32>
    %c2_118 = arith.constant 2 : index
    %c2_119 = arith.constant 2 : index
    %c0_120 = arith.constant 0 : index
    %c0_121 = arith.constant 0 : index
    %95 = vector.load %arg3[%c2_118, %c2_119, %c0_120, %c0_121] : memref<3x3x4x128xf32, #tpu.memory_space<vmem>>, vector<1x1x4x128xf32>
    %96 = vector.shape_cast %95 : vector<1x1x4x128xf32> to vector<4x128xf32>
    %cst_122 = arith.constant dense<0.000000e+00> : vector<256x128xf32>
    %97 = tpu.matmul %92, %94, %cst_122 {dimension_numbers = #tpu.dot_dimension_numbers<[1], [0], [0], [1], [0, 0, 1, 1], [], []>} : vector<256x4xf32>, vector<4x128xf32>, vector<256x128xf32> -> vector<256x128xf32>
    %98 = arith.addf %87, %97 : vector<256x128xf32>
    %cst_123 = arith.constant dense<0.000000e+00> : vector<256x128xf32>
    %99 = tpu.matmul %92, %96, %cst_123 {dimension_numbers = #tpu.dot_dimension_numbers<[1], [0], [0], [1], [0, 0, 1, 1], [], []>} : vector<256x4xf32>, vector<4x128xf32>, vector<256x128xf32> -> vector<256x128xf32>
    %100 = arith.addf %89, %99 : vector<256x128xf32>
    %c0_124 = arith.constant 0 : index
    %c0_125 = arith.constant 0 : index
    %101 = vector.load %arg4[%c0_124, %c0_125] : memref<1x128xf32, #tpu.memory_space<vmem>>, vector<1x128xf32>
    %102 = vector.broadcast %101 : vector<1x128xf32> to vector<256x128xf32>
    %103 = arith.addf %98, %102 : vector<256x128xf32>
    %c0_126 = arith.constant 0 : index
    %c0_127 = arith.constant 0 : index
    %104 = vector.load %arg5[%c0_126, %c0_127] : memref<1x128xf32, #tpu.memory_space<vmem>>, vector<1x128xf32>
    %105 = vector.broadcast %104 : vector<1x128xf32> to vector<256x128xf32>
    %106 = arith.addf %100, %105 : vector<256x128xf32>
    %107 = arith.maximumf %103, %106 : vector<256x128xf32>
    %108 = tpu.transpose %107, [1, 0] : vector<256x128xf32> -> vector<128x256xf32>
    %c0_128 = arith.constant 0 : index
    %c0_129 = arith.constant 0 : index
    %c0_130 = arith.constant 0 : index
    %109 = vector.load %arg6[%c0_128, %c0_129, %c0_130] : memref<1x128x256xf32, #tpu.memory_space<vmem>>, vector<1x128x256xf32>
    %110 = vector.shape_cast %109 : vector<1x128x256xf32> to vector<128x256xf32>
    %111 = vector.shape_cast %108 : vector<128x256xf32> to vector<1x128x256xf32>
    tpu.vector_store %arg6[%c0_128, %c0_129, %c0_130], %111 {strides = array<i32>} : memref<1x128x256xf32, #tpu.memory_space<vmem>>, vector<1x128x256xf32>,
    return
  }
  func.func @transform_0(%arg0: i32) -> (i32, i32, i32, i32) {
    %c0_i32 = arith.constant 0 : i32
    %c0_i32_0 = arith.constant 0 : i32
    %c0_i32_1 = arith.constant 0 : i32
    %c0_i32_2 = arith.constant 0 : i32
    return %arg0, %c0_i32, %c0_i32_0, %c0_i32_1 : i32, i32, i32, i32
  }
  func.func @transform_1(%arg0: i32) -> (i32, i32, i32, i32) {
    %c0_i32 = arith.constant 0 : i32
    %c0_i32_0 = arith.constant 0 : i32
    %c0_i32_1 = arith.constant 0 : i32
    %c0_i32_2 = arith.constant 0 : i32
    %c0_i32_3 = arith.constant 0 : i32
    return %c0_i32, %c0_i32_0, %c0_i32_1, %c0_i32_2 : i32, i32, i32, i32
  }
  func.func @transform_2(%arg0: i32) -> (i32, i32, i32, i32) {
    %c0_i32 = arith.constant 0 : i32
    %c0_i32_0 = arith.constant 0 : i32
    %c0_i32_1 = arith.constant 0 : i32
    %c0_i32_2 = arith.constant 0 : i32
    %c0_i32_3 = arith.constant 0 : i32
    return %c0_i32, %c0_i32_0, %c0_i32_1, %c0_i32_2 : i32, i32, i32, i32
  }
  func.func @transform_3(%arg0: i32) -> (i32, i32) {
    %c0_i32 = arith.constant 0 : i32
    %c0_i32_0 = arith.constant 0 : i32
    %c0_i32_1 = arith.constant 0 : i32
    return %c0_i32, %c0_i32_0 : i32, i32
  }
  func.func @transform_4(%arg0: i32) -> (i32, i32) {
    %c0_i32 = arith.constant 0 : i32
    %c0_i32_0 = arith.constant 0 : i32
    %c0_i32_1 = arith.constant 0 : i32
    return %c0_i32, %c0_i32_0 : i32, i32
  }
  func.func @transform_5(%arg0: i32) -> (i32, i32, i32) {
    %c0_i32 = arith.constant 0 : i32
    %c0_i32_0 = arith.constant 0 : i32
    %c0_i32_1 = arith.constant 0 : i32
    return %arg0, %c0_i32, %c0_i32_0 : i32, i32, i32
  }
}

</mosaic_0001>

<bundles_post_ra>
// kernel: mfm_forward.1
= control target key start
LH: loop header
LB: loop body
LE: loop exit
PB: predicated region body
PF: predicated region fallthrough
CT: control target
= control target key end

     0   :  { %s9096_s18 = smov 0   ;;  %s10808_s0 = inlined_call_operand.vmem [shape: f32[2,18,18,4], index: 0, kind: input, shape index: {}]   ;;  %s10809_s1 = inlined_call_operand.vmem [shape: f32[3,3,4,128], index: 1, kind: input, shape index: {}]   ;;  %s10810_s2 = inlined_call_operand.vmem [shape: f32[3,3,4,128], index: 2, kind: input, shape index: {}]   ;;  %s10811_s3 = inlined_call_operand.vmem [shape: f32[1,128], index: 3, kind: input, shape index: {}]   ;;  %s10812_s4 = inlined_call_operand.vmem [shape: f32[1,128], index: 4, kind: input, shape index: {}]   ;;  %s10813_s5 = inlined_call_operand.vmem [shape: f32[2,128,256], index: 5, kind: output, shape index: {}]  }
   0x1 LB: > { %s6228_s19 = sadd.s32 4294967295, %s9064_s18   ;;  %p6232_p0 = scmp.ge.s32.totalorder %s9064_s18, 1  ;;  %s9064_s18 = sphi %s9096_s18, %s15_s18  }
   0x2   : > { %p187_p1 = scmp.lt.s32.totalorder %s9064_s18, 3 }
   0x4   : > { %p188_p2 = pnand %p6232_p0, %p187_p1 }
   0x6   : > { %191 = sbr.rel (%p188_p2) target bundleno = 972 (0x3cc), region = 40 }
   0xd   : > { %v6236_v0 = vld [vmem:[%s10809_s1 + $0x4] sm:$0xf]  ;;  %vm392_vm0 = vcmask 1043456   ;;  %p215_p3 = scmp.lt.s32.totalorder %s6228_s19, 1  ;;  %v257_v2 = vld [vmem:[%s10809_s1] sm:$0xf] }
   0xe   : > { %v6237_v1 = vld [vmem:[%s10810_s2 + $0x4] sm:$0xf]  ;;  %7637 = vmatprep.subr.msk.mxu0 %vm392_vm0, %v6236_v0  ;;  %v258_v3 = vld [vmem:[%s10810_s2] sm:$0xf]  ;;  %vm295_vm1 = vcmask 31744  }
   0xf   : > { %7737 = vmatprep.subr.msk.mxu1 %vm392_vm0, %v6237_v1  ;;  %7638 = vmatpush3.msk.msra.mxu0 %vm392_vm0, %v6236_v0  ;;  %s10935_s19 = smov (!%p215_p3, %s6228_s19), 1  ;;  %v9142_v7 = vld [vmem:[%s10809_s1 + $0x8] sm:$0xf]  ;;  %v9374_v41 = vld [vmem:[%s10809_s1 + $0xc] sm:$0xf] }
  0x10   : > { %7738 = vmatpush3.msk.msra.mxu1 %vm392_vm0, %v6237_v1  ;;  %7687 = vmatprep.subr.msk.mxu0 %vm392_vm0, %v257_v2  ;;  %s9049_s28 = smul.u32 432, %s10935_s19  ;;  %v9147_v8 = vld [vmem:[%s10810_s2 + $0x8] sm:$0xf]  ;;  %v9379_v42 = vld [vmem:[%s10810_s2 + $0xc] sm:$0xf] }
  0x11   : > { %7787 = vmatprep.subr.msk.mxu1 %vm392_vm0, %v258_v3 }
  0x12   : > { %s9128_s6 = scalar_lea.vmem %s10808_s0, %s9049_s28 }
  0x13   : > { %v259_v4 = vld [vmem:[%s9128_s6 + $0x1] sm:$0xff]  ;;  %v260_v5 = vld [vmem:[%s9128_s6 + $0x9] sm:$0xff]  ;;  %v9135_v6 = vld [vmem:[%s9128_s6 + $0x19] sm:$0xff] }
  0x14   : > { %7639 = vmatprep.mubr.msk.f32.mxu0 %vm295_vm1, %v259_v4  ;;  %7739 = vmatprep.mubr.msk.f32.mxu1 %vm295_vm1, %v259_v4  ;;  %v9152_v9 = vld [vmem:[%s9128_s6 + $0x21] sm:$0xff]  ;;  %v9159_v10 = vld [vmem:[%s9128_s6 + $0x31] sm:$0xff]  ;;  %v9174_v11 = vld [vmem:[%s9128_s6 + $0x39] sm:$0xff] }
  0x15   : > { %7640 = vmatmul.mubr.msk.f32.vlgmr.msra.gmra.mrb[0].mxu0 %vm295_vm1, %v260_v5  ;;  %7740 = vmatmul.mubr.msk.f32.vlgmr.msra.gmra.mrb[0].mxu1 %vm295_vm1, %v260_v5  ;;  %v9177_v12 = vld [vmem:[%s9128_s6 + $0x49] sm:$0xff]  ;;  %v9188_v13 = vld [vmem:[%s9128_s6 + $0x51] sm:$0xff]  ;;  %v9191_v14 = vld [vmem:[%s9128_s6 + $0x61] sm:$0xff] }
  0x16   : > { %7688 = vmatpush3.msk.msra.mxu0 %vm392_vm0, %v257_v2  ;;  %7788 = vmatpush3.msk.msra.mxu1 %vm392_vm0, %v258_v3  ;;  %v9202_v15 = vld [vmem:[%s9128_s6 + $0x69] sm:$0xff]  ;;  %v9205_v16 = vld [vmem:[%s9128_s6 + $0x79] sm:$0xff]  ;;  %v9216_v17 = vld [vmem:[%s9128_s6 + $0x81] sm:$0xff] }
  0x17   : > { %7642 = vmatprep.mubr.msk.f32.mxu0 %vm295_vm1, %v9135_v6  ;;  %7742 = vmatprep.mubr.msk.f32.mxu1 %vm295_vm1, %v9135_v6  ;;  %v9219_v18 = vld [vmem:[%s9128_s6 + $0x91] sm:$0xff]  ;;  %v9230_v19 = vld [vmem:[%s9128_s6 + $0x99] sm:$0xff]  ;;  %v9233_v20 = vld [vmem:[%s9128_s6 + $0xa9] sm:$0xff] }
  0x18   : > { %7837 = vmatprep.subr.msk.mxu0 %vm392_vm0, %v9142_v7  ;;  %7887 = vmatprep.subr.msk.mxu1 %vm392_vm0, %v9147_v8  ;;  %v9244_v21 = vld [vmem:[%s9128_s6 + $0xb1] sm:$0xff]  ;;  %v9247_v22 = vld [vmem:[%s9128_s6 + $0xc1] sm:$0xff]  ;;  %v9258_v23 = vld [vmem:[%s9128_s6 + $0xc9] sm:$0xff] }
  0x19   : > { %7643 = vmatmul.mubr.msk.f32.gmra.mrb[2].mxu0 %vm295_vm1, %v9152_v9  ;;  %7743 = vmatmul.mubr.msk.f32.gmra.mrb[2].mxu1 %vm295_vm1, %v9152_v9  ;;  %v9261_v24 = vld [vmem:[%s9128_s6 + $0xd9] sm:$0xff]  ;;  %v9272_v25 = vld [vmem:[%s9128_s6 + $0xe1] sm:$0xff]  ;;  %v9275_v26 = vld [vmem:[%s9128_s6 + $0xf1] sm:$0xff] }
  0x1a   : > { %7645 = vmatprep.mubr.msk.f32.mxu0 %vm295_vm1, %v9159_v10  ;;  %7745 = vmatprep.mubr.msk.f32.mxu1 %vm295_vm1, %v9159_v10  ;;  %v9286_v27 = vld [vmem:[%s9128_s6 + $0xf9] sm:$0xff]  ;;  %v9289_v28 = vld [vmem:[%s9128_s6 + $0x109] sm:$0xff]  ;;  %v9300_v29 = vld [vmem:[%s9128_s6 + $0x111] sm:$0xff] }
  0x1b   : > { %v9303_v30 = vld [vmem:[%s9128_s6 + $0x121] sm:$0xff]  ;;  %v9314_v31 = vld [vmem:[%s9128_s6 + $0x129] sm:$0xff]  ;;  %v9317_v32 = vld [vmem:[%s9128_s6 + $0x139] sm:$0xff] }
  0x1c   : > { %v9328_v33 = vld [vmem:[%s9128_s6 + $0x141] sm:$0xff]  ;;  %v9331_v34 = vld [vmem:[%s9128_s6 + $0x151] sm:$0xff]  ;;  %v9342_v35 = vld [vmem:[%s9128_s6 + $0x159] sm:$0xff] }
  0x1d   : > { %7646 = vmatmul.mubr.msk.f32.gmra.mrb[4].mxu0 %vm295_vm1, %v9174_v11  ;;  %7746 = vmatmul.mubr.msk.f32.gmra.mrb[4].mxu1 %vm295_vm1, %v9174_v11  ;;  %10874 = vst [vmem:[#allocation2_spill] sm:$0xff] %v9342_v35  ;;  %v9345_v36 = vld [vmem:[%s9128_s6 + $0x169] sm:$0xff]  ;;  %v9356_v37 = vld [vmem:[%s9128_s6 + $0x171] sm:$0xff]  ;;  %v225_v38 = vld [vmem:[%s9128_s6] sm:$0xff] }
  0x1e   : > { %7648 = vmatprep.mubr.msk.f32.mxu0 %vm295_vm1, %v9177_v12  ;;  %7748 = vmatprep.mubr.msk.f32.mxu1 %vm295_vm1, %v9177_v12  ;;  %10875 = vst [vmem:[#allocation3_spill] sm:$0xff] %v9345_v36  ;;  %10876 = vst [vmem:[#allocation4_spill] sm:$0xff] %v9356_v37  ;;  %v226_v39 = vld [vmem:[%s9128_s6 + $0x8] sm:$0xff]  ;;  %v9367_v40 = vld [vmem:[%s9128_s6 + $0x18] sm:$0xff] }
  0x1f   : > { %v9386_v43 = vld [vmem:[%s9128_s6 + $0x20] sm:$0xff]  ;;  %v9393_v44 = vld [vmem:[%s9128_s6 + $0x30] sm:$0xff]  ;;  %v9408_v45 = vld [vmem:[%s9128_s6 + $0x38] sm:$0xff] }
  0x20   : > { %v9411_v46 = vld [vmem:[%s9128_s6 + $0x48] sm:$0xff]  ;;  %v9422_v47 = vld [vmem:[%s9128_s6 + $0x50] sm:$0xff]  ;;  %v9425_v48 = vld [vmem:[%s9128_s6 + $0x60] sm:$0xff] }
  0x21   : > { %7649 = vmatmul.mubr.msk.f32.gmra.mrb[6].mxu0 %vm295_vm1, %v9188_v13  ;;  %7749 = vmatmul.mubr.msk.f32.gmra.mrb[6].mxu1 %vm295_vm1, %v9188_v13  ;;  %v9436_v49 = vld [vmem:[%s9128_s6 + $0x68] sm:$0xff]  ;;  %v9439_v50 = vld [vmem:[%s9128_s6 + $0x78] sm:$0xff]  ;;  %v9450_v51 = vld [vmem:[%s9128_s6 + $0x80] sm:$0xff] }
  0x22   : > { %7651 = vmatprep.mubr.msk.f32.mxu0 %vm295_vm1, %v9191_v14  ;;  %7751 = vmatprep.mubr.msk.f32.mxu1 %vm295_vm1, %v9191_v14  ;;  %v9453_v52 = vld [vmem:[%s9128_s6 + $0x90] sm:$0xff]  ;;  %v9464_v53 = vld [vmem:[%s9128_s6 + $0x98] sm:$0xff]  ;;  %v9467_v54 = vld [vmem:[%s9128_s6 + $0xa8] sm:$0xff] }
  0x23   : > { %v9478_v55 = vld [vmem:[%s9128_s6 + $0xb0] sm:$0xff]  ;;  %v9481_v56 = vld [vmem:[%s9128_s6 + $0xc0] sm:$0xff]  ;;  %v9492_v57 = vld [vmem:[%s9128_s6 + $0xc8] sm:$0xff] }
  0x24   : > { %v9495_v58 = vld [vmem:[%s9128_s6 + $0xd8] sm:$0xff]  ;;  %v9506_v59 = vld [vmem:[%s9128_s6 + $0xe0] sm:$0xff]  ;;  %v9509_v60 = vld [vmem:[%s9128_s6 + $0xf0] sm:$0xff] }
  0x25   : > { %7652 = vmatmul.mubr.msk.f32.gmra.mrb[8].mxu0 %vm295_vm1, %v9202_v15  ;;  %7752 = vmatmul.mubr.msk.f32.gmra.mrb[8].mxu1 %vm295_vm1, %v9202_v15  ;;  %v9520_v61 = vld [vmem:[%s9128_s6 + $0xf8] sm:$0xff]  ;;  %v9523_v62 = vld [vmem:[%s9128_s6 + $0x108] sm:$0xff]  ;;  %v9534_v63 = vld [vmem:[%s9128_s6 + $0x110] sm:$0xff] }
  0x26   : > { %7654 = vmatprep.mubr.msk.f32.mxu0 %vm295_vm1, %v9205_v16  ;;  %7754 = vmatprep.mubr.msk.f32.mxu1 %vm295_vm1, %v9205_v16  ;;  %v9537_v0 = vld [vmem:[%s9128_s6 + $0x120] sm:$0xff]  ;;  %v9548_v1 = vld [vmem:[%s9128_s6 + $0x128] sm:$0xff]  ;;  %v9551_v2 = vld [vmem:[%s9128_s6 + $0x138] sm:$0xff] }
  0x27   : > { %v9562_v3 = vld [vmem:[%s9128_s6 + $0x140] sm:$0xff]  ;;  %v9565_v4 = vld [vmem:[%s9128_s6 + $0x150] sm:$0xff]  ;;  %v9576_v5 = vld [vmem:[%s9128_s6 + $0x158] sm:$0xff] }
  0x29   : > { %7655 = vmatmul.mubr.msk.f32.gmra.mrb[10].mxu0 %vm295_vm1, %v9216_v17  ;;  %7755 = vmatmul.mubr.msk.f32.gmra.mrb[10].mxu1 %vm295_vm1, %v9216_v17 }
  0x2a   : > { %7657 = vmatprep.mubr.msk.f32.mxu0 %vm295_vm1, %v9219_v18  ;;  %7757 = vmatprep.mubr.msk.f32.mxu1 %vm295_vm1, %v9219_v18 }
  0x2d   : > { %7658 = vmatmul.mubr.msk.f32.gmra.mrb[12].mxu0 %vm295_vm1, %v9230_v19  ;;  %7758 = vmatmul.mubr.msk.f32.gmra.mrb[12].mxu1 %vm295_vm1, %v9230_v19 }
  0x2e   : > { %7660 = vmatprep.mubr.msk.f32.mxu0 %vm295_vm1, %v9233_v20  ;;  %7760 = vmatprep.mubr.msk.f32.mxu1 %vm295_vm1, %v9233_v20 }
  0x31   : > { %7661 = vmatmul.mubr.msk.f32.gmra.mrb[14].mxu0 %vm295_vm1, %v9244_v21  ;;  %7761 = vmatmul.mubr.msk.f32.gmra.mrb[14].mxu1 %vm295_vm1, %v9244_v21 }
  0x32   : > { %7663 = vmatprep.mubr.msk.f32.mxu0 %vm295_vm1, %v9247_v22  ;;  %7763 = vmatprep.mubr.msk.f32.mxu1 %vm295_vm1, %v9247_v22 }
  0x35   : > { %7664 = vmatmul.mubr.msk.f32.gmra.mrb[16].mxu0 %vm295_vm1, %v9258_v23  ;;  %7764 = vmatmul.mubr.msk.f32.gmra.mrb[16].mxu1 %vm295_vm1, %v9258_v23 }
  0x36   : > { %7666 = vmatprep.mubr.msk.f32.mxu0 %vm295_vm1, %v9261_v24  ;;  %7766 = vmatprep.mubr.msk.f32.mxu1 %vm295_vm1, %v9261_v24 }
  0x39   : > { %7667 = vmatmul.mubr.msk.f32.gmra.mrb[18].mxu0 %vm295_vm1, %v9272_v25  ;;  %7767 = vmatmul.mubr.msk.f32.gmra.mrb[18].mxu1 %vm295_vm1, %v9272_v25 }
  0x3a   : > { %7669 = vmatprep.mubr.msk.f32.mxu0 %vm295_vm1, %v9275_v26  ;;  %7769 = vmatprep.mubr.msk.f32.mxu1 %vm295_vm1, %v9275_v26 }
  0x3d   : > { %7670 = vmatmul.mubr.msk.f32.gmra.mrb[20].mxu0 %vm295_vm1, %v9286_v27  ;;  %7770 = vmatmul.mubr.msk.f32.gmra.mrb[20].mxu1 %vm295_vm1, %v9286_v27 }
  0x3e   : > { %7672 = vmatprep.mubr.msk.f32.mxu0 %vm295_vm1, %v9289_v28  ;;  %7772 = vmatprep.mubr.msk.f32.mxu1 %vm295_vm1, %v9289_v28 }
  0x41   : > { %7673 = vmatmul.mubr.msk.f32.gmra.mrb[22].mxu0 %vm295_vm1, %v9300_v29  ;;  %7773 = vmatmul.mubr.msk.f32.gmra.mrb[22].mxu1 %vm295_vm1, %v9300_v29 }
  0x42   : > { %7675 = vmatprep.mubr.msk.f32.mxu0 %vm295_vm1, %v9303_v30  ;;  %7775 = vmatprep.mubr.msk.f32.mxu1 %vm295_vm1, %v9303_v30 }
  0x45   : > { %7676 = vmatmul.mubr.msk.f32.gmra.mrb[24].mxu0 %vm295_vm1, %v9314_v31  ;;  %7776 = vmatmul.mubr.msk.f32.gmra.mrb[24].mxu1 %vm295_vm1, %v9314_v31 }
  0x46   : > { %7678 = vmatprep.mubr.msk.f32.mxu0 %vm295_vm1, %v9317_v32  ;;  %7778 = vmatprep.mubr.msk.f32.mxu1 %vm295_vm1, %v9317_v32 }
  0x49   : > { %7679 = vmatmul.mubr.msk.f32.gmra.mrb[26].mxu0 %vm295_vm1, %v9328_v33  ;;  %7779 = vmatmul.mubr.msk.f32.gmra.mrb[26].mxu1 %vm295_vm1, %v9328_v33 }
  0x4a   : > { %7681 = vmatprep.mubr.msk.f32.mxu0 %vm295_vm1, %v9331_v34  ;;  %7781 = vmatprep.mubr.msk.f32.mxu1 %vm295_vm1, %v9331_v34 }
  0x4d   : > { %7682 = vmatmul.mubr.msk.f32.gmra.mrb[28].mxu0 %vm295_vm1, %v9342_v35  ;;  %7782 = vmatmul.mubr.msk.f32.gmra.mrb[28].mxu1 %vm295_vm1, %v9342_v35  ;;  %v9613_v35 = vld [vmem:[%s10810_s2 + $0x10] sm:$0xf] }
  0x4e   : > { %7684 = vmatprep.mubr.msk.f32.mxu0 %vm295_vm1, %v9345_v36  ;;  %7784 = vmatprep.mubr.msk.f32.mxu1 %vm295_vm1, %v9345_v36  ;;  %v9608_v36 = vld [vmem:[%s10809_s1 + $0x10] sm:$0xf] }
  0x51   : > { %7685 = vmatmul.mubr.msk.f32.gmra.mrb[30].mxu0 %vm295_vm1, %v9356_v37  ;;  %7785 = vmatmul.mubr.msk.f32.gmra.mrb[30].mxu1 %vm295_vm1, %v9356_v37  ;;  %v9601_v37 = vld [vmem:[%s9128_s6 + $0x1a] sm:$0xff] }
  0x52   : > { %7689 = vmatprep.mubr.msk.f32.mxu0 %vm295_vm1, %v225_v38  ;;  %7789 = vmatprep.mubr.msk.f32.mxu1 %vm295_vm1, %v225_v38  ;;  %v1401_v38 = vld [vmem:[%s9128_s6 + $0x2] sm:$0xff]  ;;  %10877 = vst [vmem:[#allocation5_spill] sm:$0xff] %v9601_v37 }
  0x55   : > { %7690 = vmatmul.mubr.msk.f32.vlgmr.msra.gmra.mrb[0].mxu0 %vm295_vm1, %v226_v39  ;;  %7790 = vmatmul.mubr.msk.f32.vlgmr.msra.gmra.mrb[0].mxu1 %vm295_vm1, %v226_v39  ;;  %v1402_v39 = vld [vmem:[%s9128_s6 + $0xa] sm:$0xff] }
  0x56   : > { %7838 = vmatpush3.msk.msra.mxu0 %vm392_vm0, %v9142_v7  ;;  %7888 = vmatpush3.msk.msra.mxu1 %vm392_vm0, %v9147_v8  ;;  %v9579_v7 = vld [vmem:[%s9128_s6 + $0x168] sm:$0xff]  ;;  %v9590_v8 = vld [vmem:[%s9128_s6 + $0x170] sm:$0xff] }
  0x57   : > { %7692 = vmatprep.mubr.msk.f32.mxu0 %vm295_vm1, %v9367_v40  ;;  %7792 = vmatprep.mubr.msk.f32.mxu1 %vm295_vm1, %v9367_v40 }
  0x58   : > { %7937 = vmatprep.subr.msk.mxu0 %vm392_vm0, %v9374_v41  ;;  %7987 = vmatprep.subr.msk.mxu1 %vm392_vm0, %v9379_v42 }
  0x59   : > { %7693 = vmatmul.mubr.msk.f32.gmra.mrb[2].mxu0 %vm295_vm1, %v9386_v43  ;;  %7793 = vmatmul.mubr.msk.f32.gmra.mrb[2].mxu1 %vm295_vm1, %v9386_v43 }
  0x5a   : > { %7695 = vmatprep.mubr.msk.f32.mxu0 %vm295_vm1, %v9393_v44  ;;  %7795 = vmatprep.mubr.msk.f32.mxu1 %vm295_vm1, %v9393_v44 }
  0x5d   : > { %7696 = vmatmul.mubr.msk.f32.gmra.mrb[4].mxu0 %vm295_vm1, %v9408_v45  ;;  %7796 = vmatmul.mubr.msk.f32.gmra.mrb[4].mxu1 %vm295_vm1, %v9408_v45 }
  0x5e   : > { %7698 = vmatprep.mubr.msk.f32.mxu0 %vm295_vm1, %v9411_v46  ;;  %7798 = vmatprep.mubr.msk.f32.mxu1 %vm295_vm1, %v9411_v46 }
  0x61   : > { %7699 = vmatmul.mubr.msk.f32.gmra.mrb[6].mxu0 %vm295_vm1, %v9422_v47  ;;  %7799 = vmatmul.mubr.msk.f32.gmra.mrb[6].mxu1 %vm295_vm1, %v9422_v47 }
  0x62   : > { %7701 = vmatprep.mubr.msk.f32.mxu0 %vm295_vm1, %v9425_v48  ;;  %7801 = vmatprep.mubr.msk.f32.mxu1 %vm295_vm1, %v9425_v48 }
  0x65   : > { %7702 = vmatmul.mubr.msk.f32.gmra.mrb[8].mxu0 %vm295_vm1, %v9436_v49  ;;  %7802 = vmatmul.mubr.msk.f32.gmra.mrb[8].mxu1 %vm295_vm1, %v9436_v49 }
  0x66   : > { %7704 = vmatprep.mubr.msk.f32.mxu0 %vm295_vm1, %v9439_v50  ;;  %7804 = vmatprep.mubr.msk.f32.mxu1 %vm295_vm1, %v9439_v50 }
  0x69   : > { %7705 = vmatmul.mubr.msk.f32.gmra.mrb[10].mxu0 %vm295_vm1, %v9450_v51  ;;  %7805 = vmatmul.mubr.msk.f32.gmra.mrb[10].mxu1 %vm295_vm1, %v9450_v51 }
  0x6a   : > { %7707 = vmatprep.mubr.msk.f32.mxu0 %vm295_vm1, %v9453_v52  ;;  %7807 = vmatprep.mubr.msk.f32.mxu1 %vm295_vm1, %v9453_v52 }
  0x6d   : > { %7708 = vmatmul.mubr.msk.f32.gmra.mrb[12].mxu0 %vm295_vm1, %v9464_v53  ;;  %7808 = vmatmul.mubr.msk.f32.gmra.mrb[12].mxu1 %vm295_vm1, %v9464_v53 }
  0x6e   : > { %7710 = vmatprep.mubr.msk.f32.mxu0 %vm295_vm1, %v9467_v54  ;;  %7810 = vmatprep.mubr.msk.f32.mxu1 %vm295_vm1, %v9467_v54 }
  0x71   : > { %7711 = vmatmul.mubr.msk.f32.gmra.mrb[14].mxu0 %vm295_vm1, %v9478_v55  ;;  %7811 = vmatmul.mubr.msk.f32.gmra.mrb[14].mxu1 %vm295_vm1, %v9478_v55 }
  0x72   : > { %7713 = vmatprep.mubr.msk.f32.mxu0 %vm295_vm1, %v9481_v56  ;;  %7813 = vmatprep.mubr.msk.f32.mxu1 %vm295_vm1, %v9481_v56 }
  0x75   : > { %7714 = vmatmul.mubr.msk.f32.gmra.mrb[16].mxu0 %vm295_vm1, %v9492_v57  ;;  %7814 = vmatmul.mubr.msk.f32.gmra.mrb[16].mxu1 %vm295_vm1, %v9492_v57 }
  0x76   : > { %7716 = vmatprep.mubr.msk.f32.mxu0 %vm295_vm1, %v9495_v58  ;;  %7816 = vmatprep.mubr.msk.f32.mxu1 %vm295_vm1, %v9495_v58 }
  0x79   : > { %7717 = vmatmul.mubr.msk.f32.gmra.mrb[18].mxu0 %vm295_vm1, %v9506_v59  ;;  %7817 = vmatmul.mubr.msk.f32.gmra.mrb[18].mxu1 %vm295_vm1, %v9506_v59 }
  0x7a   : > { %7719 = vmatprep.mubr.msk.f32.mxu0 %vm295_vm1, %v9509_v60  ;;  %7819 = vmatprep.mubr.msk.f32.mxu1 %vm295_vm1, %v9509_v60 }
  0x7d   : > { %7720 = vmatmul.mubr.msk.f32.gmra.mrb[20].mxu0 %vm295_vm1, %v9520_v61  ;;  %7820 = vmatmul.mubr.msk.f32.gmra.mrb[20].mxu1 %vm295_vm1, %v9520_v61 }
  0x7e   : > { %7722 = vmatprep.mubr.msk.f32.mxu0 %vm295_vm1, %v9523_v62  ;;  %7822 = vmatprep.mubr.msk.f32.mxu1 %vm295_vm1, %v9523_v62 }
  0x81   : > { %7723 = vmatmul.mubr.msk.f32.gmra.mrb[22].mxu0 %vm295_vm1, %v9534_v63  ;;  %7823 = vmatmul.mubr.msk.f32.gmra.mrb[22].mxu1 %vm295_vm1, %v9534_v63 }
  0x82   : > { %7725 = vmatprep.mubr.msk.f32.mxu0 %vm295_vm1, %v9537_v0  ;;  %7825 = vmatprep.mubr.msk.f32.mxu1 %vm295_vm1, %v9537_v0 }
  0x85   : > { %7726 = vmatmul.mubr.msk.f32.gmra.mrb[24].mxu0 %vm295_vm1, %v9548_v1  ;;  %7826 = vmatmul.mubr.msk.f32.gmra.mrb[24].mxu1 %vm295_vm1, %v9548_v1 }
  0x86   : > { %7728 = vmatprep.mubr.msk.f32.mxu0 %vm295_vm1, %v9551_v2  ;;  %7828 = vmatprep.mubr.msk.f32.mxu1 %vm295_vm1, %v9551_v2 }
  0x89   : > { %7729 = vmatmul.mubr.msk.f32.gmra.mrb[26].mxu0 %vm295_vm1, %v9562_v3  ;;  %7829 = vmatmul.mubr.msk.f32.gmra.mrb[26].mxu1 %vm295_vm1, %v9562_v3 }
  0x8a   : > { %7731 = vmatprep.mubr.msk.f32.mxu0 %vm295_vm1, %v9565_v4  ;;  %7831 = vmatprep.mubr.msk.f32.mxu1 %vm295_vm1, %v9565_v4 }
  0x8d   : > { %7732 = vmatmul.mubr.msk.f32.gmra.mrb[28].mxu0 %vm295_vm1, %v9576_v5  ;;  %7832 = vmatmul.mubr.msk.f32.gmra.mrb[28].mxu1 %vm295_vm1, %v9576_v5 }
  0x8e   : > { %7734 = vmatprep.mubr.msk.f32.mxu0 %vm295_vm1, %v9579_v7  ;;  %7834 = vmatprep.mubr.msk.f32.mxu1 %vm295_vm1, %v9579_v7 }
  0x91   : > { %7735 = vmatmul.mubr.msk.f32.gmra.mrb[30].mxu0 %vm295_vm1, %v9590_v8  ;;  %7835 = vmatmul.mubr.msk.f32.gmra.mrb[30].mxu1 %vm295_vm1, %v9590_v8 }
  0x92   : > { %7839 = vmatprep.mubr.msk.f32.mxu0 %vm295_vm1, %v1401_v38  ;;  %7889 = vmatprep.mubr.msk.f32.mxu1 %vm295_vm1, %v1401_v38  ;;  %v9620_v38 = vld [vmem:[%s9128_s6 + $0x22] sm:$0xff] }
  0x93   : > { %10878 = vst [vmem:[#allocation6_spill] sm:$0xff] %v9620_v38 }
  0x95   : > { %7840 = vmatmul.mubr.msk.f32.vlgmr.msra.gmra.mrb[0].mxu0 %vm295_vm1, %v1402_v39  ;;  %7890 = vmatmul.mubr.msk.f32.vlgmr.msra.gmra.mrb[0].mxu1 %vm295_vm1, %v1402_v39  ;;  %v9627_v39 = vld [vmem:[%s9128_s6 + $0x32] sm:$0xff] }
  0x96   : > { %7938 = vmatpush3.msk.msra.mxu0 %vm392_vm0, %v9374_v41  ;;  %7988 = vmatpush3.msk.msra.mxu1 %vm392_vm0, %v9379_v42  ;;  %10879 = vst [vmem:[#allocation7_spill] sm:$0xff] %v9627_v39  ;;  %v9642_v41 = vld [vmem:[%s9128_s6 + $0x3a] sm:$0xff]  ;;  %v9645_v42 = vld [vmem:[%s9128_s6 + $0x4a] sm:$0xff] }
  0x97   : > { %7842 = vmatprep.mubr.msk.f32.mxu0 %vm295_vm1, %v9601_v37  ;;  %7892 = vmatprep.mubr.msk.f32.mxu1 %vm295_vm1, %v9601_v37  ;;  %10880 = vst [vmem:[#allocation8_spill] sm:$0xff] %v9642_v41  ;;  %10881 = vst [vmem:[#allocation9_spill] sm:$0xff] %v9645_v42  ;;  %v9813_v37 = vld [vmem:[%s9128_s6 + $0x16a] sm:$0xff] }
  0x98   : > { %8037 = vmatprep.subr.msk.mxu0 %vm392_vm0, %v9608_v36  ;;  %8087 = vmatprep.subr.msk.mxu1 %vm392_vm0, %v9613_v35  ;;  %10902 = vst [vmem:[#allocation30_spill] sm:$0xff] %v9813_v37 }
  0x99   : > { %7843 = vmatmul.mubr.msk.f32.gmra.mrb[2].mxu0 %vm295_vm1, %v9620_v38  ;;  %7893 = vmatmul.mubr.msk.f32.gmra.mrb[2].mxu1 %vm295_vm1, %v9620_v38  ;;  %v9656_v38 = vld [vmem:[%s9128_s6 + $0x52] sm:$0xff] }
  0x9a   : > { %7845 = vmatprep.mubr.msk.f32.mxu0 %vm295_vm1, %v9627_v39  ;;  %7895 = vmatprep.mubr.msk.f32.mxu1 %vm295_vm1, %v9627_v39  ;;  %10882 = vst [vmem:[#allocation10_spill] sm:$0xff] %v9656_v38  ;;  %v9659_v39 = vld [vmem:[%s9128_s6 + $0x62] sm:$0xff] }
  0x9b   : > { %10883 = vst [vmem:[#allocation11_spill] sm:$0xff] %v9659_v39 }
  0x9d   : > { %7846 = vmatmul.mubr.msk.f32.gmra.mrb[4].mxu0 %vm295_vm1, %v9642_v41  ;;  %7896 = vmatmul.mubr.msk.f32.gmra.mrb[4].mxu1 %vm295_vm1, %v9642_v41  ;;  %v9670_v41 = vld [vmem:[%s9128_s6 + $0x6a] sm:$0xff] }
  0x9e   : > { %7848 = vmatprep.mubr.msk.f32.mxu0 %vm295_vm1, %v9645_v42  ;;  %7898 = vmatprep.mubr.msk.f32.mxu1 %vm295_vm1, %v9645_v42  ;;  %10884 = vst [vmem:[#allocation12_spill] sm:$0xff] %v9670_v41  ;;  %v9673_v42 = vld [vmem:[%s9128_s6 + $0x7a] sm:$0xff] }
  0x9f   : > { %10885 = vst [vmem:[#allocation13_spill] sm:$0xff] %v9673_v42 }
  0xa1   : > { %7849 = vmatmul.mubr.msk.f32.gmra.mrb[6].mxu0 %vm295_vm1, %v9656_v38  ;;  %7899 = vmatmul.mubr.msk.f32.gmra.mrb[6].mxu1 %vm295_vm1, %v9656_v38  ;;  %v9684_v38 = vld [vmem:[%s9128_s6 + $0x82] sm:$0xff] }
  0xa2   : > { %7851 = vmatprep.mubr.msk.f32.mxu0 %vm295_vm1, %v9659_v39  ;;  %7901 = vmatprep.mubr.msk.f32.mxu1 %vm295_vm1, %v9659_v39  ;;  %10886 = vst [vmem:[#allocation14_spill] sm:$0xff] %v9684_v38  ;;  %v9687_v39 = vld [vmem:[%s9128_s6 + $0x92] sm:$0xff] }
  0xa3   : > { %10887 = vst [vmem:[#allocation15_spill] sm:$0xff] %v9687_v39 }
  0xa5   : > { %7852 = vmatmul.mubr.msk.f32.gmra.mrb[8].mxu0 %vm295_vm1, %v9670_v41  ;;  %7902 = vmatmul.mubr.msk.f32.gmra.mrb[8].mxu1 %vm295_vm1, %v9670_v41  ;;  %v9698_v41 = vld [vmem:[%s9128_s6 + $0x9a] sm:$0xff] }
  0xa6   : > { %7854 = vmatprep.mubr.msk.f32.mxu0 %vm295_vm1, %v9673_v42  ;;  %7904 = vmatprep.mubr.msk.f32.mxu1 %vm295_vm1, %v9673_v42  ;;  %10888 = vst [vmem:[#allocation16_spill] sm:$0xff] %v9698_v41  ;;  %v9701_v42 = vld [vmem:[%s9128_s6 + $0xaa] sm:$0xff] }
  0xa7   : > { %10889 = vst [vmem:[#allocation17_spill] sm:$0xff] %v9701_v42 }
  0xa9   : > { %7855 = vmatmul.mubr.msk.f32.gmra.mrb[10].mxu0 %vm295_vm1, %v9684_v38  ;;  %7905 = vmatmul.mubr.msk.f32.gmra.mrb[10].mxu1 %vm295_vm1, %v9684_v38  ;;  %v9712_v38 = vld [vmem:[%s9128_s6 + $0xb2] sm:$0xff] }
  0xaa   : > { %7857 = vmatprep.mubr.msk.f32.mxu0 %vm295_vm1, %v9687_v39  ;;  %7907 = vmatprep.mubr.msk.f32.mxu1 %vm295_vm1, %v9687_v39  ;;  %10890 = vst [vmem:[#allocation18_spill] sm:$0xff] %v9712_v38  ;;  %v9715_v39 = vld [vmem:[%s9128_s6 + $0xc2] sm:$0xff] }
  0xab   : > { %10891 = vst [vmem:[#allocation19_spill] sm:$0xff] %v9715_v39 }
  0xad   : > { %7858 = vmatmul.mubr.msk.f32.gmra.mrb[12].mxu0 %vm295_vm1, %v9698_v41  ;;  %7908 = vmatmul.mubr.msk.f32.gmra.mrb[12].mxu1 %vm295_vm1, %v9698_v41  ;;  %v9726_v41 = vld [vmem:[%s9128_s6 + $0xca] sm:$0xff] }
  0xae   : > { %7860 = vmatprep.mubr.msk.f32.mxu0 %vm295_vm1, %v9701_v42  ;;  %7910 = vmatprep.mubr.msk.f32.mxu1 %vm295_vm1, %v9701_v42  ;;  %10892 = vst [vmem:[#allocation20_spill] sm:$0xff] %v9726_v41  ;;  %v9729_v42 = vld [vmem:[%s9128_s6 + $0xda] sm:$0xff] }
  0xaf   : > { %10893 = vst [vmem:[#allocation21_spill] sm:$0xff] %v9729_v42 }
  0xb1   : > { %7861 = vmatmul.mubr.msk.f32.gmra.mrb[14].mxu0 %vm295_vm1, %v9712_v38  ;;  %7911 = vmatmul.mubr.msk.f32.gmra.mrb[14].mxu1 %vm295_vm1, %v9712_v38  ;;  %v9740_v38 = vld [vmem:[%s9128_s6 + $0xe2] sm:$0xff] }
  0xb2   : > { %7863 = vmatprep.mubr.msk.f32.mxu0 %vm295_vm1, %v9715_v39  ;;  %7913 = vmatprep.mubr.msk.f32.mxu1 %vm295_vm1, %v9715_v39  ;;  %10894 = vst [vmem:[#allocation22_spill] sm:$0xff] %v9740_v38  ;;  %v9743_v39 = vld [vmem:[%s9128_s6 + $0xf2] sm:$0xff] }
  0xb3   : > { %10895 = vst [vmem:[#allocation23_spill] sm:$0xff] %v9743_v39 }
  0xb5   : > { %7864 = vmatmul.mubr.msk.f32.gmra.mrb[16].mxu0 %vm295_vm1, %v9726_v41  ;;  %7914 = vmatmul.mubr.msk.f32.gmra.mrb[16].mxu1 %vm295_vm1, %v9726_v41  ;;  %v9754_v41 = vld [vmem:[%s9128_s6 + $0xfa] sm:$0xff] }
  0xb6   : > { %7866 = vmatprep.mubr.msk.f32.mxu0 %vm295_vm1, %v9729_v42  ;;  %7916 = vmatprep.mubr.msk.f32.mxu1 %vm295_vm1, %v9729_v42  ;;  %10896 = vst [vmem:[#allocation24_spill] sm:$0xff] %v9754_v41  ;;  %v9757_v42 = vld [vmem:[%s9128_s6 + $0x10a] sm:$0xff] }
  0xb7   : > { %10897 = vst [vmem:[#allocation25_spill] sm:$0xff] %v9757_v42 }
  0xb9   : > { %7867 = vmatmul.mubr.msk.f32.gmra.mrb[18].mxu0 %vm295_vm1, %v9740_v38  ;;  %7917 = vmatmul.mubr.msk.f32.gmra.mrb[18].mxu1 %vm295_vm1, %v9740_v38  ;;  %v9768_v38 = vld [vmem:[%s9128_s6 + $0x112] sm:$0xff] }
  0xba   : > { %7869 = vmatprep.mubr.msk.f32.mxu0 %vm295_vm1, %v9743_v39  ;;  %7919 = vmatprep.mubr.msk.f32.mxu1 %vm295_vm1, %v9743_v39  ;;  %10898 = vst [vmem:[#allocation26_spill] sm:$0xff] %v9768_v38  ;;  %v9771_v39 = vld [vmem:[%s9128_s6 + $0x122] sm:$0xff] }
  0xbb   : > { %10899 = vst [vmem:[#allocation27_spill] sm:$0xff] %v9771_v39 }
  0xbd   : > { %7870 = vmatmul.mubr.msk.f32.gmra.mrb[20].mxu0 %vm295_vm1, %v9754_v41  ;;  %7920 = vmatmul.mubr.msk.f32.gmra.mrb[20].mxu1 %vm295_vm1, %v9754_v41  ;;  %v9782_v41 = vld [vmem:[%s9128_s6 + $0x12a] sm:$0xff] }
  0xbe   : > { %7872 = vmatprep.mubr.msk.f32.mxu0 %vm295_vm1, %v9757_v42  ;;  %7922 = vmatprep.mubr.msk.f32.mxu1 %vm295_vm1, %v9757_v42  ;;  %10900 = vst [vmem:[#allocation28_spill] sm:$0xff] %v9782_v41  ;;  %v9785_v42 = vld [vmem:[%s9128_s6 + $0x13a] sm:$0xff] }
  0xc1   : > { %7873 = vmatmul.mubr.msk.f32.gmra.mrb[22].mxu0 %vm295_vm1, %v9768_v38  ;;  %7923 = vmatmul.mubr.msk.f32.gmra.mrb[22].mxu1 %vm295_vm1, %v9768_v38  ;;  %v9796_v38 = vld [vmem:[%s9128_s6 + $0x142] sm:$0xff] }
  0xc2   : > { %7875 = vmatprep.mubr.msk.f32.mxu0 %vm295_vm1, %v9771_v39  ;;  %7925 = vmatprep.mubr.msk.f32.mxu1 %vm295_vm1, %v9771_v39  ;;  %10901 = vst [vmem:[#allocation29_spill] sm:$0xff] %v9796_v38  ;;  %v9799_v39 = vld [vmem:[%s9128_s6 + $0x152] sm:$0xff] }
  0xc5   : > { %7876 = vmatmul.mubr.msk.f32.gmra.mrb[24].mxu0 %vm295_vm1, %v9782_v41  ;;  %7926 = vmatmul.mubr.msk.f32.gmra.mrb[24].mxu1 %vm295_vm1, %v9782_v41  ;;  %v9810_v41 = vld [vmem:[%s9128_s6 + $0x15a] sm:$0xff] }
  0xc6   : > { %7878 = vmatprep.mubr.msk.f32.mxu0 %vm295_vm1, %v9785_v42  ;;  %7928 = vmatprep.mubr.msk.f32.mxu1 %vm295_vm1, %v9785_v42 }
  0xc9   : > { %7879 = vmatmul.mubr.msk.f32.gmra.mrb[26].mxu0 %vm295_vm1, %v9796_v38  ;;  %7929 = vmatmul.mubr.msk.f32.gmra.mrb[26].mxu1 %vm295_vm1, %v9796_v38  ;;  %v9824_v38 = vld [vmem:[%s9128_s6 + $0x172] sm:$0xff] }
  0xca   : > { %7881 = vmatprep.mubr.msk.f32.mxu0 %vm295_vm1, %v9799_v39  ;;  %7931 = vmatprep.mubr.msk.f32.mxu1 %vm295_vm1, %v9799_v39  ;;  %10903 = vst [vmem:[#allocation31_spill] sm:$0xff] %v9824_v38 }
  0xcd   : > { %7882 = vmatmul.mubr.msk.f32.gmra.mrb[28].mxu0 %vm295_vm1, %v9810_v41  ;;  %7932 = vmatmul.mubr.msk.f32.gmra.mrb[28].mxu1 %vm295_vm1, %v9810_v41 }
  0xce   : > { %7884 = vmatprep.mubr.msk.f32.mxu0 %vm295_vm1, %v9813_v37  ;;  %7934 = vmatprep.mubr.msk.f32.mxu1 %vm295_vm1, %v9813_v37  ;;  %v9841_v37 = vld [vmem:[%s10809_s1 + $0x14] sm:$0xf] }
  0xd1   : > { %7885 = vmatmul.mubr.msk.f32.gmra.mrb[30].mxu0 %vm295_vm1, %v9824_v38  ;;  %7935 = vmatmul.mubr.msk.f32.gmra.mrb[30].mxu1 %vm295_vm1, %v9824_v38  ;;  %v9846_v38 = vld [vmem:[%s10810_s2 + $0x14] sm:$0xf] }
  0xd2   : > { %7939 = vmatprep.mubr.msk.f32.mxu0 %vm295_vm1, %v9367_v40  ;;  %7989 = vmatprep.mubr.msk.f32.mxu1 %vm295_vm1, %v9367_v40  ;;  %v9993_v40 = vld [vmem:[%s10809_s1 + $0x18] sm:$0xf] }
  0xd5   : > { %7940 = vmatmul.mubr.msk.f32.vlgmr.msra.gmra.mrb[0].mxu0 %vm295_vm1, %v9386_v43  ;;  %7990 = vmatmul.mubr.msk.f32.vlgmr.msra.gmra.mrb[0].mxu1 %vm295_vm1, %v9386_v43  ;;  %v9998_v43 = vld [vmem:[%s10810_s2 + $0x18] sm:$0xf] }
  0xd6   : > { %8038 = vmatpush3.msk.msra.mxu0 %vm392_vm0, %v9608_v36  ;;  %8088 = vmatpush3.msk.msra.mxu1 %vm392_vm0, %v9613_v35  ;;  %v9965_v35 = vld [vmem:[%s9128_s6 + $0x180] sm:$0xff]  ;;  %v9976_v36 = vld [vmem:[%s9128_s6 + $0x188] sm:$0xff] }
  0xd7   : > { %7942 = vmatprep.mubr.msk.f32.mxu0 %vm295_vm1, %v9393_v44  ;;  %7992 = vmatprep.mubr.msk.f32.mxu1 %vm295_vm1, %v9393_v44 }
  0xd8   : > { %8137 = vmatprep.subr.msk.mxu0 %vm392_vm0, %v9841_v37  ;;  %8187 = vmatprep.subr.msk.mxu1 %vm392_vm0, %v9846_v38 }
  0xd9   : > { %7943 = vmatmul.mubr.msk.f32.gmra.mrb[2].mxu0 %vm295_vm1, %v9408_v45  ;;  %7993 = vmatmul.mubr.msk.f32.gmra.mrb[2].mxu1 %vm295_vm1, %v9408_v45 }
  0xda   : > { %7945 = vmatprep.mubr.msk.f32.mxu0 %vm295_vm1, %v9411_v46  ;;  %7995 = vmatprep.mubr.msk.f32.mxu1 %vm295_vm1, %v9411_v46 }
  0xdd   : > { %7946 = vmatmul.mubr.msk.f32.gmra.mrb[4].mxu0 %vm295_vm1, %v9422_v47  ;;  %7996 = vmatmul.mubr.msk.f32.gmra.mrb[4].mxu1 %vm295_vm1, %v9422_v47 }
  0xde   : > { %7948 = vmatprep.mubr.msk.f32.mxu0 %vm295_vm1, %v9425_v48  ;;  %7998 = vmatprep.mubr.msk.f32.mxu1 %vm295_vm1, %v9425_v48 }
  0xe1   : > { %7949 = vmatmul.mubr.msk.f32.gmra.mrb[6].mxu0 %vm295_vm1, %v9436_v49  ;;  %7999 = vmatmul.mubr.msk.f32.gmra.mrb[6].mxu1 %vm295_vm1, %v9436_v49 }
  0xe2   : > { %7951 = vmatprep.mubr.msk.f32.mxu0 %vm295_vm1, %v9439_v50  ;;  %8001 = vmatprep.mubr.msk.f32.mxu1 %vm295_vm1, %v9439_v50 }
  0xe5   : > { %7952 = vmatmul.mubr.msk.f32.gmra.mrb[8].mxu0 %vm295_vm1, %v9450_v51  ;;  %8002 = vmatmul.mubr.msk.f32.gmra.mrb[8].mxu1 %vm295_vm1, %v9450_v51 }
  0xe6   : > { %7954 = vmatprep.mubr.msk.f32.mxu0 %vm295_vm1, %v9453_v52  ;;  %8004 = vmatprep.mubr.msk.f32.mxu1 %vm295_vm1, %v9453_v52 }
  0xe9   : > { %7955 = vmatmul.mubr.msk.f32.gmra.mrb[10].mxu0 %vm295_vm1, %v9464_v53  ;;  %8005 = vmatmul.mubr.msk.f32.gmra.mrb[10].mxu1 %vm295_vm1, %v9464_v53 }
  0xea   : > { %7957 = vmatprep.mubr.msk.f32.mxu0 %vm295_vm1, %v9467_v54  ;;  %8007 = vmatprep.mubr.msk.f32.mxu1 %vm295_vm1, %v9467_v54 }
  0xed   : > { %7958 = vmatmul.mubr.msk.f32.gmra.mrb[12].mxu0 %vm295_vm1, %v9478_v55  ;;  %8008 = vmatmul.mubr.msk.f32.gmra.mrb[12].mxu1 %vm295_vm1, %v9478_v55 }
  0xee   : > { %7960 = vmatprep.mubr.msk.f32.mxu0 %vm295_vm1, %v9481_v56  ;;  %8010 = vmatprep.mubr.msk.f32.mxu1 %vm295_vm1, %v9481_v56 }
  0xf1   : > { %7961 = vmatmul.mubr.msk.f32.gmra.mrb[14].mxu0 %vm295_vm1, %v9492_v57  ;;  %8011 = vmatmul.mubr.msk.f32.gmra.mrb[14].mxu1 %vm295_vm1, %v9492_v57 }
  0xf2   : > { %7963 = vmatprep.mubr.msk.f32.mxu0 %vm295_vm1, %v9495_v58  ;;  %8013 = vmatprep.mubr.msk.f32.mxu1 %vm295_vm1, %v9495_v58 }
  0xf5   : > { %7964 = vmatmul.mubr.msk.f32.gmra.mrb[16].mxu0 %vm295_vm1, %v9506_v59  ;;  %8014 = vmatmul.mubr.msk.f32.gmra.mrb[16].mxu1 %vm295_vm1, %v9506_v59 }
  0xf6   : > { %7966 = vmatprep.mubr.msk.f32.mxu0 %vm295_vm1, %v9509_v60  ;;  %8016 = vmatprep.mubr.msk.f32.mxu1 %vm295_vm1, %v9509_v60 }
  0xf9   : > { %7967 = vmatmul.mubr.msk.f32.gmra.mrb[18].mxu0 %vm295_vm1, %v9520_v61  ;;  %8017 = vmatmul.mubr.msk.f32.gmra.mrb[18].mxu1 %vm295_vm1, %v9520_v61 }
  0xfa   : > { %7969 = vmatprep.mubr.msk.f32.mxu0 %vm295_vm1, %v9523_v62  ;;  %8019 = vmatprep.mubr.msk.f32.mxu1 %vm295_vm1, %v9523_v62 }
  0xfd   : > { %7970 = vmatmul.mubr.msk.f32.gmra.mrb[20].mxu0 %vm295_vm1, %v9534_v63  ;;  %8020 = vmatmul.mubr.msk.f32.gmra.mrb[20].mxu1 %vm295_vm1, %v9534_v63 }
  0xfe   : > { %7972 = vmatprep.mubr.msk.f32.mxu0 %vm295_vm1, %v9537_v0  ;;  %8022 = vmatprep.mubr.msk.f32.mxu1 %vm295_vm1, %v9537_v0 }
 0x101   : > { %7973 = vmatmul.mubr.msk.f32.gmra.mrb[22].mxu0 %vm295_vm1, %v9548_v1  ;;  %8023 = vmatmul.mubr.msk.f32.gmra.mrb[22].mxu1 %vm295_vm1, %v9548_v1 }
 0x102   : > { %7975 = vmatprep.mubr.msk.f32.mxu0 %vm295_vm1, %v9551_v2  ;;  %8025 = vmatprep.mubr.msk.f32.mxu1 %vm295_vm1, %v9551_v2 }
 0x105   : > { %7976 = vmatmul.mubr.msk.f32.gmra.mrb[24].mxu0 %vm295_vm1, %v9562_v3  ;;  %8026 = vmatmul.mubr.msk.f32.gmra.mrb[24].mxu1 %vm295_vm1, %v9562_v3 }
 0x106   : > { %7978 = vmatprep.mubr.msk.f32.mxu0 %vm295_vm1, %v9565_v4  ;;  %8028 = vmatprep.mubr.msk.f32.mxu1 %vm295_vm1, %v9565_v4 }
 0x109   : > { %7979 = vmatmul.mubr.msk.f32.gmra.mrb[26].mxu0 %vm295_vm1, %v9576_v5  ;;  %8029 = vmatmul.mubr.msk.f32.gmra.mrb[26].mxu1 %vm295_vm1, %v9576_v5 }
 0x10a   : > { %7981 = vmatprep.mubr.msk.f32.mxu0 %vm295_vm1, %v9579_v7  ;;  %8031 = vmatprep.mubr.msk.f32.mxu1 %vm295_vm1, %v9579_v7 }
 0x10d   : > { %7982 = vmatmul.mubr.msk.f32.gmra.mrb[28].mxu0 %vm295_vm1, %v9590_v8  ;;  %8032 = vmatmul.mubr.msk.f32.gmra.mrb[28].mxu1 %vm295_vm1, %v9590_v8 }
 0x10e   : > { %7984 = vmatprep.mubr.msk.f32.mxu0 %vm295_vm1, %v9965_v35  ;;  %8034 = vmatprep.mubr.msk.f32.mxu1 %vm295_vm1, %v9965_v35 }
 0x111   : > { %7985 = vmatmul.mubr.msk.f32.gmra.mrb[30].mxu0 %vm295_vm1, %v9976_v36  ;;  %8035 = vmatmul.mubr.msk.f32.gmra.mrb[30].mxu1 %vm295_vm1, %v9976_v36 }
 0x112   : > { %8039 = vmatprep.mubr.msk.f32.mxu0 %vm295_vm1, %v9135_v6  ;;  %8089 = vmatprep.mubr.msk.f32.mxu1 %vm295_vm1, %v9135_v6  ;;  %v10904_v6 = vld [vmem:[#allocation2_spill] sm:$0xff] }
 0x115   : > { %8040 = vmatmul.mubr.msk.f32.vlgmr.msra.gmra.mrb[0].mxu0 %vm295_vm1, %v9152_v9  ;;  %8090 = vmatmul.mubr.msk.f32.vlgmr.msra.gmra.mrb[0].mxu1 %vm295_vm1, %v9152_v9  ;;  %v10905_v9 = vld [vmem:[#allocation3_spill] sm:$0xff] }
 0x116   : > { %8138 = vmatpush3.msk.msra.mxu0 %vm392_vm0, %v9841_v37  ;;  %8188 = vmatpush3.msk.msra.mxu1 %vm392_vm0, %v9846_v38  ;;  %v10927_v37 = vld [vmem:[#allocation25_spill] sm:$0xff]  ;;  %v10928_v38 = vld [vmem:[#allocation26_spill] sm:$0xff] }
 0x117   : > { %8042 = vmatprep.mubr.msk.f32.mxu0 %vm295_vm1, %v9159_v10  ;;  %8092 = vmatprep.mubr.msk.f32.mxu1 %vm295_vm1, %v9159_v10  ;;  %v10117_v10 = vld [vmem:[%s9128_s6 + $0x181] sm:$0xff] }
 0x118   : > { %8237 = vmatprep.subr.msk.mxu0 %vm392_vm0, %v9993_v40  ;;  %8287 = vmatprep.subr.msk.mxu1 %vm392_vm0, %v9998_v43 }
 0x119   : > { %8043 = vmatmul.mubr.msk.f32.gmra.mrb[2].mxu0 %vm295_vm1, %v9174_v11  ;;  %8093 = vmatmul.mubr.msk.f32.gmra.mrb[2].mxu1 %vm295_vm1, %v9174_v11  ;;  %v10906_v11 = vld [vmem:[#allocation4_spill] sm:$0xff] }
 0x11a   : > { %8045 = vmatprep.mubr.msk.f32.mxu0 %vm295_vm1, %v9177_v12  ;;  %8095 = vmatprep.mubr.msk.f32.mxu1 %vm295_vm1, %v9177_v12  ;;  %v10128_v12 = vld [vmem:[%s9128_s6 + $0x189] sm:$0xff] }
 0x11d   : > { %8046 = vmatmul.mubr.msk.f32.gmra.mrb[4].mxu0 %vm295_vm1, %v9188_v13  ;;  %8096 = vmatmul.mubr.msk.f32.gmra.mrb[4].mxu1 %vm295_vm1, %v9188_v13  ;;  %v10907_v13 = vld [vmem:[#allocation5_spill] sm:$0xff] }
 0x11e   : > { %8048 = vmatprep.mubr.msk.f32.mxu0 %vm295_vm1, %v9191_v14  ;;  %8098 = vmatprep.mubr.msk.f32.mxu1 %vm295_vm1, %v9191_v14  ;;  %v10908_v14 = vld [vmem:[#allocation6_spill] sm:$0xff] }
 0x121   : > { %8049 = vmatmul.mubr.msk.f32.gmra.mrb[6].mxu0 %vm295_vm1, %v9202_v15  ;;  %8099 = vmatmul.mubr.msk.f32.gmra.mrb[6].mxu1 %vm295_vm1, %v9202_v15  ;;  %v10145_v15 = vld [vmem:[%s10809_s1 + $0x1c] sm:$0xf] }
 0x122   : > { %8051 = vmatprep.mubr.msk.f32.mxu0 %vm295_vm1, %v9205_v16  ;;  %8101 = vmatprep.mubr.msk.f32.mxu1 %vm295_vm1, %v9205_v16  ;;  %v10150_v16 = vld [vmem:[%s10810_s2 + $0x1c] sm:$0xf] }
 0x125   : > { %8052 = vmatmul.mubr.msk.f32.gmra.mrb[8].mxu0 %vm295_vm1, %v9216_v17  ;;  %8102 = vmatmul.mubr.msk.f32.gmra.mrb[8].mxu1 %vm295_vm1, %v9216_v17  ;;  %v10909_v17 = vld [vmem:[#allocation7_spill] sm:$0xff] }
 0x126   : > { %8054 = vmatprep.mubr.msk.f32.mxu0 %vm295_vm1, %v9219_v18  ;;  %8104 = vmatprep.mubr.msk.f32.mxu1 %vm295_vm1, %v9219_v18  ;;  %v10910_v18 = vld [vmem:[#allocation8_spill] sm:$0xff] }
 0x129   : > { %8055 = vmatmul.mubr.msk.f32.gmra.mrb[10].mxu0 %vm295_vm1, %v9230_v19  ;;  %8105 = vmatmul.mubr.msk.f32.gmra.mrb[10].mxu1 %vm295_vm1, %v9230_v19  ;;  %v10911_v19 = vld [vmem:[#allocation9_spill] sm:$0xff] }
 0x12a   : > { %8057 = vmatprep.mubr.msk.f32.mxu0 %vm295_vm1, %v9233_v20  ;;  %8107 = vmatprep.mubr.msk.f32.mxu1 %vm295_vm1, %v9233_v20  ;;  %v10912_v20 = vld [vmem:[#allocation10_spill] sm:$0xff] }
 0x12d   : > { %8058 = vmatmul.mubr.msk.f32.gmra.mrb[12].mxu0 %vm295_vm1, %v9244_v21  ;;  %8108 = vmatmul.mubr.msk.f32.gmra.mrb[12].mxu1 %vm295_vm1, %v9244_v21  ;;  %v10913_v21 = vld [vmem:[#allocation11_spill] sm:$0xff] }
 0x12e   : > { %8060 = vmatprep.mubr.msk.f32.mxu0 %vm295_vm1, %v9247_v22  ;;  %8110 = vmatprep.mubr.msk.f32.mxu1 %vm295_vm1, %v9247_v22  ;;  %v10914_v22 = vld [vmem:[#allocation12_spill] sm:$0xff] }
 0x131   : > { %8061 = vmatmul.mubr.msk.f32.gmra.mrb[14].mxu0 %vm295_vm1, %v9258_v23  ;;  %8111 = vmatmul.mubr.msk.f32.gmra.mrb[14].mxu1 %vm295_vm1, %v9258_v23  ;;  %v10915_v23 = vld [vmem:[#allocation13_spill] sm:$0xff] }
 0x132   : > { %8063 = vmatprep.mubr.msk.f32.mxu0 %vm295_vm1, %v9261_v24  ;;  %8113 = vmatprep.mubr.msk.f32.mxu1 %vm295_vm1, %v9261_v24  ;;  %v10916_v24 = vld [vmem:[#allocation14_spill] sm:$0xff] }
 0x135   : > { %8064 = vmatmul.mubr.msk.f32.gmra.mrb[16].mxu0 %vm295_vm1, %v9272_v25  ;;  %8114 = vmatmul.mubr.msk.f32.gmra.mrb[16].mxu1 %vm295_vm1, %v9272_v25  ;;  %v10917_v25 = vld [vmem:[#allocation15_spill] sm:$0xff] }
 0x136   : > { %8066 = vmatprep.mubr.msk.f32.mxu0 %vm295_vm1, %v9275_v26  ;;  %8116 = vmatprep.mubr.msk.f32.mxu1 %vm295_vm1, %v9275_v26  ;;  %v10918_v26 = vld [vmem:[#allocation16_spill] sm:$0xff] }
 0x139   : > { %8067 = vmatmul.mubr.msk.f32.gmra.mrb[18].mxu0 %vm295_vm1, %v9286_v27  ;;  %8117 = vmatmul.mubr.msk.f32.gmra.mrb[18].mxu1 %vm295_vm1, %v9286_v27  ;;  %v10919_v27 = vld [vmem:[#allocation17_spill] sm:$0xff] }
 0x13a   : > { %8069 = vmatprep.mubr.msk.f32.mxu0 %vm295_vm1, %v9289_v28  ;;  %8119 = vmatprep.mubr.msk.f32.mxu1 %vm295_vm1, %v9289_v28  ;;  %v10920_v28 = vld [vmem:[#allocation18_spill] sm:$0xff] }
 0x13d   : > { %8070 = vmatmul.mubr.msk.f32.gmra.mrb[20].mxu0 %vm295_vm1, %v9300_v29  ;;  %8120 = vmatmul.mubr.msk.f32.gmra.mrb[20].mxu1 %vm295_vm1, %v9300_v29  ;;  %v10921_v29 = vld [vmem:[#allocation19_spill] sm:$0xff] }
 0x13e   : > { %8072 = vmatprep.mubr.msk.f32.mxu0 %vm295_vm1, %v9303_v30  ;;  %8122 = vmatprep.mubr.msk.f32.mxu1 %vm295_vm1, %v9303_v30  ;;  %v10922_v30 = vld [vmem:[#allocation20_spill] sm:$0xff] }
 0x141   : > { %8073 = vmatmul.mubr.msk.f32.gmra.mrb[22].mxu0 %vm295_vm1, %v9314_v31  ;;  %8123 = vmatmul.mubr.msk.f32.gmra.mrb[22].mxu1 %vm295_vm1, %v9314_v31  ;;  %v10923_v31 = vld [vmem:[#allocation21_spill] sm:$0xff] }
 0x142   : > { %8075 = vmatprep.mubr.msk.f32.mxu0 %vm295_vm1, %v9317_v32  ;;  %8125 = vmatprep.mubr.msk.f32.mxu1 %vm295_vm1, %v9317_v32  ;;  %v10924_v32 = vld [vmem:[#allocation22_spill] sm:$0xff] }
 0x145   : > { %8076 = vmatmul.mubr.msk.f32.gmra.mrb[24].mxu0 %vm295_vm1, %v9328_v33  ;;  %8126 = vmatmul.mubr.msk.f32.gmra.mrb[24].mxu1 %vm295_vm1, %v9328_v33  ;;  %v10925_v33 = vld [vmem:[#allocation23_spill] sm:$0xff] }
 0x146   : > { %8078 = vmatprep.mubr.msk.f32.mxu0 %vm295_vm1, %v9331_v34  ;;  %8128 = vmatprep.mubr.msk.f32.mxu1 %vm295_vm1, %v9331_v34  ;;  %v10926_v34 = vld [vmem:[#allocation24_spill] sm:$0xff] }
 0x149   : > { %8079 = vmatmul.mubr.msk.f32.gmra.mrb[26].mxu0 %vm295_vm1, %v10904_v6  ;;  %8129 = vmatmul.mubr.msk.f32.gmra.mrb[26].mxu1 %vm295_vm1, %v10904_v6  ;;  %v10931_v6 = vld [vmem:[#allocation29_spill] sm:$0xff] }
 0x14a   : > { %8081 = vmatprep.mubr.msk.f32.mxu0 %vm295_vm1, %v10905_v9  ;;  %8131 = vmatprep.mubr.msk.f32.mxu1 %vm295_vm1, %v10905_v9  ;;  %v10932_v9 = vld [vmem:[#allocation30_spill] sm:$0xff] }
 0x14d   : > { %8082 = vmatmul.mubr.msk.f32.gmra.mrb[28].mxu0 %vm295_vm1, %v10906_v11  ;;  %8132 = vmatmul.mubr.msk.f32.gmra.mrb[28].mxu1 %vm295_vm1, %v10906_v11  ;;  %v10933_v11 = vld [vmem:[#allocation31_spill] sm:$0xff] }
 0x14e   : > { %8084 = vmatprep.mubr.msk.f32.mxu0 %vm295_vm1, %v10117_v10  ;;  %8134 = vmatprep.mubr.msk.f32.mxu1 %vm295_vm1, %v10117_v10 }
 0x151   : > { %8085 = vmatmul.mubr.msk.f32.gmra.mrb[30].mxu0 %vm295_vm1, %v10128_v12  ;;  %8135 = vmatmul.mubr.msk.f32.gmra.mrb[30].mxu1 %vm295_vm1, %v10128_v12 }
 0x152   : > { %8139 = vmatprep.mubr.msk.f32.mxu0 %vm295_vm1, %v10907_v13  ;;  %8189 = vmatprep.mubr.msk.f32.mxu1 %vm295_vm1, %v10907_v13  ;;  %v10302_v13 = vld [vmem:[%s10810_s2 + $0x20] sm:$0xf] }
 0x155   : > { %8140 = vmatmul.mubr.msk.f32.vlgmr.msra.gmra.mrb[0].mxu0 %vm295_vm1, %v10908_v14  ;;  %8190 = vmatmul.mubr.msk.f32.vlgmr.msra.gmra.mrb[0].mxu1 %vm295_vm1, %v10908_v14  ;;  %v6868_v14 = vld [vmem:[%s9128_s6 + $0x199] sm:$0xff] }
 0x156   : > { %8238 = vmatpush3.msk.msra.mxu0 %vm392_vm0, %v9993_v40  ;;  %8288 = vmatpush3.msk.msra.mxu1 %vm392_vm0, %v9998_v43  ;;  %v10929_v40 = vld [vmem:[#allocation27_spill] sm:$0xff]  ;;  %v10930_v43 = vld [vmem:[#allocation28_spill] sm:$0xff] }
 0x157   : > { %8142 = vmatprep.mubr.msk.f32.mxu0 %vm295_vm1, %v10909_v17  ;;  %8192 = vmatprep.mubr.msk.f32.mxu1 %vm295_vm1, %v10909_v17  ;;  %v6940_v17 = vld [vmem:[%s9128_s6 + $0x4a] sm:$0xff] }
 0x158   : > { %8337 = vmatprep.subr.msk.mxu0 %vm392_vm0, %v10145_v15  ;;  %8387 = vmatprep.subr.msk.mxu1 %vm392_vm0, %v10150_v16 }
 0x159   : > { %8143 = vmatmul.mubr.msk.f32.gmra.mrb[2].mxu0 %vm295_vm1, %v10910_v18  ;;  %8193 = vmatmul.mubr.msk.f32.gmra.mrb[2].mxu1 %vm295_vm1, %v10910_v18  ;;  %v6942_v18 = vld [vmem:[%s9128_s6 + $0x62] sm:$0xff] }
 0x15a   : > { %8145 = vmatprep.mubr.msk.f32.mxu0 %vm295_vm1, %v10911_v19  ;;  %8195 = vmatprep.mubr.msk.f32.mxu1 %vm295_vm1, %v10911_v19  ;;  %v6943_v19 = vld [vmem:[%s9128_s6 + $0x6a] sm:$0xff] }
 0x15d   : > { %8146 = vmatmul.mubr.msk.f32.gmra.mrb[4].mxu0 %vm295_vm1, %v10912_v20  ;;  %8196 = vmatmul.mubr.msk.f32.gmra.mrb[4].mxu1 %vm295_vm1, %v10912_v20  ;;  %v6944_v20 = vld [vmem:[%s9128_s6 + $0x7a] sm:$0xff] }
 0x15e   : > { %8148 = vmatprep.mubr.msk.f32.mxu0 %vm295_vm1, %v10913_v21  ;;  %8198 = vmatprep.mubr.msk.f32.mxu1 %vm295_vm1, %v10913_v21  ;;  %v6945_v21 = vld [vmem:[%s9128_s6 + $0x82] sm:$0xff] }
 0x161   : > { %8149 = vmatmul.mubr.msk.f32.gmra.mrb[6].mxu0 %vm295_vm1, %v10914_v22  ;;  %8199 = vmatmul.mubr.msk.f32.gmra.mrb[6].mxu1 %vm295_vm1, %v10914_v22  ;;  %v6946_v22 = vld [vmem:[%s9128_s6 + $0x92] sm:$0xff] }
 0x162   : > { %8151 = vmatprep.mubr.msk.f32.mxu0 %vm295_vm1, %v10915_v23  ;;  %8201 = vmatprep.mubr.msk.f32.mxu1 %vm295_vm1, %v10915_v23  ;;  %v6947_v23 = vld [vmem:[%s9128_s6 + $0x9a] sm:$0xff] }
 0x165   : > { %8152 = vmatmul.mubr.msk.f32.gmra.mrb[8].mxu0 %vm295_vm1, %v10916_v24  ;;  %8202 = vmatmul.mubr.msk.f32.gmra.mrb[8].mxu1 %vm295_vm1, %v10916_v24  ;;  %v6948_v24 = vld [vmem:[%s9128_s6 + $0xaa] sm:$0xff] }
 0x166   : > { %8154 = vmatprep.mubr.msk.f32.mxu0 %vm295_vm1, %v10917_v25  ;;  %8204 = vmatprep.mubr.msk.f32.mxu1 %vm295_vm1, %v10917_v25  ;;  %v6949_v25 = vld [vmem:[%s9128_s6 + $0xb2] sm:$0xff] }
 0x169   : > { %8155 = vmatmul.mubr.msk.f32.gmra.mrb[10].mxu0 %vm295_vm1, %v10918_v26  ;;  %8205 = vmatmul.mubr.msk.f32.gmra.mrb[10].mxu1 %vm295_vm1, %v10918_v26  ;;  %v6950_v26 = vld [vmem:[%s9128_s6 + $0xc2] sm:$0xff] }
 0x16a   : > { %8157 = vmatprep.mubr.msk.f32.mxu0 %vm295_vm1, %v10919_v27  ;;  %8207 = vmatprep.mubr.msk.f32.mxu1 %vm295_vm1, %v10919_v27  ;;  %v6951_v27 = vld [vmem:[%s9128_s6 + $0xca] sm:$0xff] }
 0x16d   : > { %8158 = vmatmul.mubr.msk.f32.gmra.mrb[12].mxu0 %vm295_vm1, %v10920_v28  ;;  %8208 = vmatmul.mubr.msk.f32.gmra.mrb[12].mxu1 %vm295_vm1, %v10920_v28  ;;  %v6952_v28 = vld [vmem:[%s9128_s6 + $0xda] sm:$0xff] }
 0x16e   : > { %8160 = vmatprep.mubr.msk.f32.mxu0 %vm295_vm1, %v10921_v29  ;;  %8210 = vmatprep.mubr.msk.f32.mxu1 %vm295_vm1, %v10921_v29  ;;  %v6953_v29 = vld [vmem:[%s9128_s6 + $0xe2] sm:$0xff] }
 0x171   : > { %8161 = vmatmul.mubr.msk.f32.gmra.mrb[14].mxu0 %vm295_vm1, %v10922_v30  ;;  %8211 = vmatmul.mubr.msk.f32.gmra.mrb[14].mxu1 %vm295_vm1, %v10922_v30  ;;  %v6954_v30 = vld [vmem:[%s9128_s6 + $0xf2] sm:$0xff] }
 0x172   : > { %8163 = vmatprep.mubr.msk.f32.mxu0 %vm295_vm1, %v10923_v31  ;;  %8213 = vmatprep.mubr.msk.f32.mxu1 %vm295_vm1, %v10923_v31  ;;  %v6955_v31 = vld [vmem:[%s9128_s6 + $0xfa] sm:$0xff] }
 0x175   : > { %8164 = vmatmul.mubr.msk.f32.gmra.mrb[16].mxu0 %vm295_vm1, %v10924_v32  ;;  %8214 = vmatmul.mubr.msk.f32.gmra.mrb[16].mxu1 %vm295_vm1, %v10924_v32  ;;  %v6956_v32 = vld [vmem:[%s9128_s6 + $0x10a] sm:$0xff] }
 0x176   : > { %8166 = vmatprep.mubr.msk.f32.mxu0 %vm295_vm1, %v10925_v33  ;;  %8216 = vmatprep.mubr.msk.f32.mxu1 %vm295_vm1, %v10925_v33  ;;  %v6957_v33 = vld [vmem:[%s9128_s6 + $0x112] sm:$0xff] }
 0x179   : > { %8167 = vmatmul.mubr.msk.f32.gmra.mrb[18].mxu0 %vm295_vm1, %v10926_v34  ;;  %8217 = vmatmul.mubr.msk.f32.gmra.mrb[18].mxu1 %vm295_vm1, %v10926_v34  ;;  %v6958_v34 = vld [vmem:[%s9128_s6 + $0x122] sm:$0xff] }
 0x17a   : > { %8169 = vmatprep.mubr.msk.f32.mxu0 %vm295_vm1, %v10927_v37  ;;  %8219 = vmatprep.mubr.msk.f32.mxu1 %vm295_vm1, %v10927_v37  ;;  %v6959_v37 = vld [vmem:[%s9128_s6 + $0x12a] sm:$0xff] }
 0x17d   : > { %8170 = vmatmul.mubr.msk.f32.gmra.mrb[20].mxu0 %vm295_vm1, %v10928_v38  ;;  %8220 = vmatmul.mubr.msk.f32.gmra.mrb[20].mxu1 %vm295_vm1, %v10928_v38  ;;  %v6960_v38 = vld [vmem:[%s9128_s6 + $0x13a] sm:$0xff] }
 0x17e   : > { %8172 = vmatprep.mubr.msk.f32.mxu0 %vm295_vm1, %v10929_v40  ;;  %8222 = vmatprep.mubr.msk.f32.mxu1 %vm295_vm1, %v10929_v40  ;;  %v6961_v40 = vld [vmem:[%s9128_s6 + $0x142] sm:$0xff] }
 0x181   : > { %8173 = vmatmul.mubr.msk.f32.gmra.mrb[22].mxu0 %vm295_vm1, %v10930_v43  ;;  %8223 = vmatmul.mubr.msk.f32.gmra.mrb[22].mxu1 %vm295_vm1, %v10930_v43  ;;  %v6962_v43 = vld [vmem:[%s9128_s6 + $0x152] sm:$0xff] }
 0x182   : > { %8175 = vmatprep.mubr.msk.f32.mxu0 %vm295_vm1, %v9785_v42  ;;  %8225 = vmatprep.mubr.msk.f32.mxu1 %vm295_vm1, %v9785_v42  ;;  %v10269_v42 = vld [vmem:[%s9128_s6 + $0x182] sm:$0xff] }
 0x185   : > { %8176 = vmatmul.mubr.msk.f32.gmra.mrb[24].mxu0 %vm295_vm1, %v10931_v6  ;;  %8226 = vmatmul.mubr.msk.f32.gmra.mrb[24].mxu1 %vm295_vm1, %v10931_v6  ;;  %v6963_v6 = vld [vmem:[%s9128_s6 + $0x15a] sm:$0xff] }
 0x186   : > { %8178 = vmatprep.mubr.msk.f32.mxu0 %vm295_vm1, %v9799_v39  ;;  %8228 = vmatprep.mubr.msk.f32.mxu1 %vm295_vm1, %v9799_v39  ;;  %v10280_v39 = vld [vmem:[%s9128_s6 + $0x18a] sm:$0xff] }
 0x189   : > { %8179 = vmatmul.mubr.msk.f32.gmra.mrb[26].mxu0 %vm295_vm1, %v9810_v41  ;;  %8229 = vmatmul.mubr.msk.f32.gmra.mrb[26].mxu1 %vm295_vm1, %v9810_v41  ;;  %v10297_v41 = vld [vmem:[%s10809_s1 + $0x20] sm:$0xf] }
 0x18a   : > { %8181 = vmatprep.mubr.msk.f32.mxu0 %vm295_vm1, %v10932_v9  ;;  %8231 = vmatprep.mubr.msk.f32.mxu1 %vm295_vm1, %v10932_v9  ;;  %v6964_v9 = vld [vmem:[%s9128_s6 + $0x16a] sm:$0xff] }
 0x18d   : > { %8182 = vmatmul.mubr.msk.f32.gmra.mrb[28].mxu0 %vm295_vm1, %v10933_v11  ;;  %8232 = vmatmul.mubr.msk.f32.gmra.mrb[28].mxu1 %vm295_vm1, %v10933_v11  ;;  %v6965_v11 = vld [vmem:[%s9128_s6 + $0x172] sm:$0xff] }
 0x18e   : > { %8184 = vmatprep.mubr.msk.f32.mxu0 %vm295_vm1, %v10269_v42  ;;  %8234 = vmatprep.mubr.msk.f32.mxu1 %vm295_vm1, %v10269_v42 }
 0x191   : > { %8185 = vmatmul.mubr.msk.f32.gmra.mrb[30].mxu0 %vm295_vm1, %v10280_v39  ;;  %8235 = vmatmul.mubr.msk.f32.gmra.mrb[30].mxu1 %vm295_vm1, %v10280_v39 }
 0x192   : > { %8239 = vmatprep.mubr.msk.f32.mxu0 %vm295_vm1, %v9393_v44  ;;  %8289 = vmatprep.mubr.msk.f32.mxu1 %vm295_vm1, %v9393_v44  ;;  %v6768_v44 = vld [vmem:[%s9128_s6 + $0x198] sm:$0xff] }
 0x195   : > { %8240 = vmatmul.mubr.msk.f32.vlgmr.msra.gmra.mrb[0].mxu0 %vm295_vm1, %v9408_v45  ;;  %8290 = vmatmul.mubr.msk.f32.vlgmr.msra.gmra.mrb[0].mxu1 %vm295_vm1, %v9408_v45  ;;  %v6769_v45 = vld [vmem:[%s9128_s6 + $0x1a0] sm:$0xff] }
 0x196   : > { %8338 = vmatpush3.msk.msra.mxu0 %vm392_vm0, %v10145_v15  ;;  %8388 = vmatpush3.msk.msra.mxu1 %vm392_vm0, %v10150_v16  ;;  %v6869_v15 = vld [vmem:[%s9128_s6 + $0x1a1] sm:$0xff]  ;;  %v6938_v16 = vld [vmem:[%s9128_s6 + $0x32] sm:$0xff] }
 0x197   : > { %8242 = vmatprep.mubr.msk.f32.mxu0 %vm295_vm1, %v9411_v46  ;;  %8292 = vmatprep.mubr.msk.f32.mxu1 %vm295_vm1, %v9411_v46  ;;  %v6838_v46 = vld [vmem:[%s9128_s6 + $0x31] sm:$0xff] }
 0x198   : > { %8437 = vmatprep.subr.msk.mxu0 %vm392_vm0, %v10297_v41  ;;  %8487 = vmatprep.subr.msk.mxu1 %vm392_vm0, %v10302_v13 }
 0x199   : > { %8243 = vmatmul.mubr.msk.f32.gmra.mrb[2].mxu0 %vm295_vm1, %v9422_v47  ;;  %8293 = vmatmul.mubr.msk.f32.gmra.mrb[2].mxu1 %vm295_vm1, %v9422_v47  ;;  %v6839_v47 = vld [vmem:[%s9128_s6 + $0x39] sm:$0xff] }
 0x19a   : > { %8245 = vmatprep.mubr.msk.f32.mxu0 %vm295_vm1, %v9425_v48  ;;  %8295 = vmatprep.mubr.msk.f32.mxu1 %vm295_vm1, %v9425_v48  ;;  %v6840_v48 = vld [vmem:[%s9128_s6 + $0x49] sm:$0xff] }
 0x19d   : > { %8246 = vmatmul.mubr.msk.f32.gmra.mrb[4].mxu0 %vm295_vm1, %v9436_v49  ;;  %8296 = vmatmul.mubr.msk.f32.gmra.mrb[4].mxu1 %vm295_vm1, %v9436_v49  ;;  %v6841_v49 = vld [vmem:[%s9128_s6 + $0x51] sm:$0xff] }
 0x19e   : > { %8248 = vmatprep.mubr.msk.f32.mxu0 %vm295_vm1, %v9439_v50  ;;  %8298 = vmatprep.mubr.msk.f32.mxu1 %vm295_vm1, %v9439_v50  ;;  %v6842_v50 = vld [vmem:[%s9128_s6 + $0x61] sm:$0xff] }
 0x1a1   : > { %8249 = vmatmul.mubr.msk.f32.gmra.mrb[6].mxu0 %vm295_vm1, %v9450_v51  ;;  %8299 = vmatmul.mubr.msk.f32.gmra.mrb[6].mxu1 %vm295_vm1, %v9450_v51  ;;  %v6843_v51 = vld [vmem:[%s9128_s6 + $0x69] sm:$0xff] }
 0x1a2   : > { %8251 = vmatprep.mubr.msk.f32.mxu0 %vm295_vm1, %v9453_v52  ;;  %8301 = vmatprep.mubr.msk.f32.mxu1 %vm295_vm1, %v9453_v52  ;;  %v6844_v52 = vld [vmem:[%s9128_s6 + $0x79] sm:$0xff] }
 0x1a5   : > { %8252 = vmatmul.mubr.msk.f32.gmra.mrb[8].mxu0 %vm295_vm1, %v9464_v53  ;;  %8302 = vmatmul.mubr.msk.f32.gmra.mrb[8].mxu1 %vm295_vm1, %v9464_v53  ;;  %v6845_v53 = vld [vmem:[%s9128_s6 + $0x81] sm:$0xff] }
 0x1a6   : > { %8254 = vmatprep.mubr.msk.f32.mxu0 %vm295_vm1, %v9467_v54  ;;  %8304 = vmatprep.mubr.msk.f32.mxu1 %vm295_vm1, %v9467_v54  ;;  %v6846_v54 = vld [vmem:[%s9128_s6 + $0x91] sm:$0xff] }
 0x1a9   : > { %8255 = vmatmul.mubr.msk.f32.gmra.mrb[10].mxu0 %vm295_vm1, %v9478_v55  ;;  %8305 = vmatmul.mubr.msk.f32.gmra.mrb[10].mxu1 %vm295_vm1, %v9478_v55  ;;  %v6847_v55 = vld [vmem:[%s9128_s6 + $0x99] sm:$0xff] }
 0x1aa   : > { %8257 = vmatprep.mubr.msk.f32.mxu0 %vm295_vm1, %v9481_v56  ;;  %8307 = vmatprep.mubr.msk.f32.mxu1 %vm295_vm1, %v9481_v56  ;;  %v6848_v56 = vld [vmem:[%s9128_s6 + $0xa9] sm:$0xff] }
 0x1ad   : > { %8258 = vmatmul.mubr.msk.f32.gmra.mrb[12].mxu0 %vm295_vm1, %v9492_v57  ;;  %8308 = vmatmul.mubr.msk.f32.gmra.mrb[12].mxu1 %vm295_vm1, %v9492_v57  ;;  %v6849_v57 = vld [vmem:[%s9128_s6 + $0xb1] sm:$0xff] }
 0x1ae   : > { %8260 = vmatprep.mubr.msk.f32.mxu0 %vm295_vm1, %v9495_v58  ;;  %8310 = vmatprep.mubr.msk.f32.mxu1 %vm295_vm1, %v9495_v58  ;;  %v6850_v58 = vld [vmem:[%s9128_s6 + $0xc1] sm:$0xff] }
 0x1b1   : > { %8261 = vmatmul.mubr.msk.f32.gmra.mrb[14].mxu0 %vm295_vm1, %v9506_v59  ;;  %8311 = vmatmul.mubr.msk.f32.gmra.mrb[14].mxu1 %vm295_vm1, %v9506_v59  ;;  %v6851_v59 = vld [vmem:[%s9128_s6 + $0xc9] sm:$0xff] }
 0x1b2   : > { %8263 = vmatprep.mubr.msk.f32.mxu0 %vm295_vm1, %v9509_v60  ;;  %8313 = vmatprep.mubr.msk.f32.mxu1 %vm295_vm1, %v9509_v60  ;;  %v6852_v60 = vld [vmem:[%s9128_s6 + $0xd9] sm:$0xff] }
 0x1b5   : > { %8264 = vmatmul.mubr.msk.f32.gmra.mrb[16].mxu0 %vm295_vm1, %v9520_v61  ;;  %8314 = vmatmul.mubr.msk.f32.gmra.mrb[16].mxu1 %vm295_vm1, %v9520_v61  ;;  %v6853_v61 = vld [vmem:[%s9128_s6 + $0xe1] sm:$0xff] }
 0x1b6   : > { %8266 = vmatprep.mubr.msk.f32.mxu0 %vm295_vm1, %v9523_v62  ;;  %8316 = vmatprep.mubr.msk.f32.mxu1 %vm295_vm1, %v9523_v62  ;;  %v6854_v62 = vld [vmem:[%s9128_s6 + $0xf1] sm:$0xff] }
 0x1b9   : > { %8267 = vmatmul.mubr.msk.f32.gmra.mrb[18].mxu0 %vm295_vm1, %v9534_v63  ;;  %8317 = vmatmul.mubr.msk.f32.gmra.mrb[18].mxu1 %vm295_vm1, %v9534_v63  ;;  %v6855_v63 = vld [vmem:[%s9128_s6 + $0xf9] sm:$0xff] }
 0x1ba   : > { %8269 = vmatprep.mubr.msk.f32.mxu0 %vm295_vm1, %v9537_v0  ;;  %8319 = vmatprep.mubr.msk.f32.mxu1 %vm295_vm1, %v9537_v0  ;;  %v6856_v0 = vld [vmem:[%s9128_s6 + $0x109] sm:$0xff] }
 0x1bd   : > { %8270 = vmatmul.mubr.msk.f32.gmra.mrb[20].mxu0 %vm295_vm1, %v9548_v1  ;;  %8320 = vmatmul.mubr.msk.f32.gmra.mrb[20].mxu1 %vm295_vm1, %v9548_v1  ;;  %v6857_v1 = vld [vmem:[%s9128_s6 + $0x111] sm:$0xff] }
 0x1be   : > { %8272 = vmatprep.mubr.msk.f32.mxu0 %vm295_vm1, %v9551_v2  ;;  %8322 = vmatprep.mubr.msk.f32.mxu1 %vm295_vm1, %v9551_v2  ;;  %v6858_v2 = vld [vmem:[%s9128_s6 + $0x121] sm:$0xff] }
 0x1c1   : > { %8273 = vmatmul.mubr.msk.f32.gmra.mrb[22].mxu0 %vm295_vm1, %v9562_v3  ;;  %8323 = vmatmul.mubr.msk.f32.gmra.mrb[22].mxu1 %vm295_vm1, %v9562_v3  ;;  %v6859_v3 = vld [vmem:[%s9128_s6 + $0x129] sm:$0xff] }
 0x1c2   : > { %8275 = vmatprep.mubr.msk.f32.mxu0 %vm295_vm1, %v9565_v4  ;;  %8325 = vmatprep.mubr.msk.f32.mxu1 %vm295_vm1, %v9565_v4  ;;  %v6860_v4 = vld [vmem:[%s9128_s6 + $0x139] sm:$0xff] }
 0x1c5   : > { %8276 = vmatmul.mubr.msk.f32.gmra.mrb[24].mxu0 %vm295_vm1, %v9576_v5  ;;  %8326 = vmatmul.mubr.msk.f32.gmra.mrb[24].mxu1 %vm295_vm1, %v9576_v5  ;;  %v6861_v5 = vld [vmem:[%s9128_s6 + $0x141] sm:$0xff] }
 0x1c6   : > { %8278 = vmatprep.mubr.msk.f32.mxu0 %vm295_vm1, %v9579_v7  ;;  %8328 = vmatprep.mubr.msk.f32.mxu1 %vm295_vm1, %v9579_v7  ;;  %v6862_v7 = vld [vmem:[%s9128_s6 + $0x151] sm:$0xff] }
 0x1c9   : > { %8279 = vmatmul.mubr.msk.f32.gmra.mrb[26].mxu0 %vm295_vm1, %v9590_v8  ;;  %8329 = vmatmul.mubr.msk.f32.gmra.mrb[26].mxu1 %vm295_vm1, %v9590_v8  ;;  %v6863_v8 = vld [vmem:[%s9128_s6 + $0x159] sm:$0xff] }
 0x1ca   : > { %8281 = vmatprep.mubr.msk.f32.mxu0 %vm295_vm1, %v9965_v35  ;;  %8331 = vmatprep.mubr.msk.f32.mxu1 %vm295_vm1, %v9965_v35  ;;  %v6864_v35 = vld [vmem:[%s9128_s6 + $0x169] sm:$0xff] }
 0x1cd   : > { %8282 = vmatmul.mubr.msk.f32.gmra.mrb[28].mxu0 %vm295_vm1, %v9976_v36  ;;  %8332 = vmatmul.mubr.msk.f32.gmra.mrb[28].mxu1 %vm295_vm1, %v9976_v36  ;;  %v6865_v36 = vld [vmem:[%s9128_s6 + $0x171] sm:$0xff] }
 0x1ce   : > { %8284 = vmatprep.mubr.msk.f32.mxu0 %vm295_vm1, %v6768_v44  ;;  %8334 = vmatprep.mubr.msk.f32.mxu1 %vm295_vm1, %v6768_v44  ;;  %v10638_v44 = vld [vmem:[%s10812_s4] ss:$0 sm:$0xff] }
 0x1d1   : > { %8285 = vmatmul.mubr.msk.f32.gmra.mrb[30].mxu0 %vm295_vm1, %v6769_v45  ;;  %8335 = vmatmul.mubr.msk.f32.gmra.mrb[30].mxu1 %vm295_vm1, %v6769_v45 }
 0x1d2   : > { %8339 = vmatprep.mubr.msk.f32.mxu0 %vm295_vm1, %v6838_v46  ;;  %8389 = vmatprep.mubr.msk.f32.mxu1 %vm295_vm1, %v6838_v46 }
 0x1d5   : > { %8340 = vmatmul.mubr.msk.f32.vlgmr.msra.gmra.mrb[0].mxu0 %vm295_vm1, %v6839_v47  ;;  %8390 = vmatmul.mubr.msk.f32.vlgmr.msra.gmra.mrb[0].mxu1 %vm295_vm1, %v6839_v47 }
 0x1d6   : > { %8438 = vmatpush3.msk.msra.mxu0 %vm392_vm0, %v10297_v41  ;;  %8488 = vmatpush3.msk.msra.mxu1 %vm392_vm0, %v10302_v13  ;;  %v6968_v41 = vld [vmem:[%s9128_s6 + $0x19a] sm:$0xff]  ;;  %v6969_v13 = vld [vmem:[%s9128_s6 + $0x1a2] sm:$0xff] }
 0x1d7   : > { %8342 = vmatprep.mubr.msk.f32.mxu0 %vm295_vm1, %v6840_v48  ;;  %8392 = vmatprep.mubr.msk.f32.mxu1 %vm295_vm1, %v6840_v48 }
 0x1d9   : > { %8343 = vmatmul.mubr.msk.f32.gmra.mrb[2].mxu0 %vm295_vm1, %v6841_v49  ;;  %8393 = vmatmul.mubr.msk.f32.gmra.mrb[2].mxu1 %vm295_vm1, %v6841_v49 }
 0x1da   : > { %8345 = vmatprep.mubr.msk.f32.mxu0 %vm295_vm1, %v6842_v50  ;;  %8395 = vmatprep.mubr.msk.f32.mxu1 %vm295_vm1, %v6842_v50 }
 0x1dd   : > { %8346 = vmatmul.mubr.msk.f32.gmra.mrb[4].mxu0 %vm295_vm1, %v6843_v51  ;;  %8396 = vmatmul.mubr.msk.f32.gmra.mrb[4].mxu1 %vm295_vm1, %v6843_v51 }
 0x1de   : > { %8348 = vmatprep.mubr.msk.f32.mxu0 %vm295_vm1, %v6844_v52  ;;  %8398 = vmatprep.mubr.msk.f32.mxu1 %vm295_vm1, %v6844_v52 }
 0x1e1   : > { %8349 = vmatmul.mubr.msk.f32.gmra.mrb[6].mxu0 %vm295_vm1, %v6845_v53  ;;  %8399 = vmatmul.mubr.msk.f32.gmra.mrb[6].mxu1 %vm295_vm1, %v6845_v53 }
 0x1e2   : > { %8351 = vmatprep.mubr.msk.f32.mxu0 %vm295_vm1, %v6846_v54  ;;  %8401 = vmatprep.mubr.msk.f32.mxu1 %vm295_vm1, %v6846_v54 }
 0x1e5   : > { %8352 = vmatmul.mubr.msk.f32.gmra.mrb[8].mxu0 %vm295_vm1, %v6847_v55  ;;  %8402 = vmatmul.mubr.msk.f32.gmra.mrb[8].mxu1 %vm295_vm1, %v6847_v55 }
 0x1e6   : > { %8354 = vmatprep.mubr.msk.f32.mxu0 %vm295_vm1, %v6848_v56  ;;  %8404 = vmatprep.mubr.msk.f32.mxu1 %vm295_vm1, %v6848_v56 }
 0x1e9   : > { %8355 = vmatmul.mubr.msk.f32.gmra.mrb[10].mxu0 %vm295_vm1, %v6849_v57  ;;  %8405 = vmatmul.mubr.msk.f32.gmra.mrb[10].mxu1 %vm295_vm1, %v6849_v57 }
 0x1ea   : > { %8357 = vmatprep.mubr.msk.f32.mxu0 %vm295_vm1, %v6850_v58  ;;  %8407 = vmatprep.mubr.msk.f32.mxu1 %vm295_vm1, %v6850_v58 }
 0x1ed   : > { %8358 = vmatmul.mubr.msk.f32.gmra.mrb[12].mxu0 %vm295_vm1, %v6851_v59  ;;  %8408 = vmatmul.mubr.msk.f32.gmra.mrb[12].mxu1 %vm295_vm1, %v6851_v59 }
 0x1ee   : > { %8360 = vmatprep.mubr.msk.f32.mxu0 %vm295_vm1, %v6852_v60  ;;  %8410 = vmatprep.mubr.msk.f32.mxu1 %vm295_vm1, %v6852_v60 }
 0x1f1   : > { %8361 = vmatmul.mubr.msk.f32.gmra.mrb[14].mxu0 %vm295_vm1, %v6853_v61  ;;  %8411 = vmatmul.mubr.msk.f32.gmra.mrb[14].mxu1 %vm295_vm1, %v6853_v61 }
 0x1f2   : > { %8363 = vmatprep.mubr.msk.f32.mxu0 %vm295_vm1, %v6854_v62  ;;  %8413 = vmatprep.mubr.msk.f32.mxu1 %vm295_vm1, %v6854_v62 }
 0x1f5   : > { %8364 = vmatmul.mubr.msk.f32.gmra.mrb[16].mxu0 %vm295_vm1, %v6855_v63  ;;  %8414 = vmatmul.mubr.msk.f32.gmra.mrb[16].mxu1 %vm295_vm1, %v6855_v63 }
 0x1f6   : > { %8366 = vmatprep.mubr.msk.f32.mxu0 %vm295_vm1, %v6856_v0  ;;  %8416 = vmatprep.mubr.msk.f32.mxu1 %vm295_vm1, %v6856_v0 }
 0x1f9   : > { %8367 = vmatmul.mubr.msk.f32.gmra.mrb[18].mxu0 %vm295_vm1, %v6857_v1  ;;  %8417 = vmatmul.mubr.msk.f32.gmra.mrb[18].mxu1 %vm295_vm1, %v6857_v1 }
 0x1fa   : > { %8369 = vmatprep.mubr.msk.f32.mxu0 %vm295_vm1, %v6858_v2  ;;  %8419 = vmatprep.mubr.msk.f32.mxu1 %vm295_vm1, %v6858_v2 }
 0x1fd   : > { %8370 = vmatmul.mubr.msk.f32.gmra.mrb[20].mxu0 %vm295_vm1, %v6859_v3  ;;  %8420 = vmatmul.mubr.msk.f32.gmra.mrb[20].mxu1 %vm295_vm1, %v6859_v3 }
 0x1fe   : > { %8372 = vmatprep.mubr.msk.f32.mxu0 %vm295_vm1, %v6860_v4  ;;  %8422 = vmatprep.mubr.msk.f32.mxu1 %vm295_vm1, %v6860_v4 }
 0x201   : > { %8373 = vmatmul.mubr.msk.f32.gmra.mrb[22].mxu0 %vm295_vm1, %v6861_v5  ;;  %8423 = vmatmul.mubr.msk.f32.gmra.mrb[22].mxu1 %vm295_vm1, %v6861_v5 }
 0x202   : > { %8375 = vmatprep.mubr.msk.f32.mxu0 %vm295_vm1, %v6862_v7  ;;  %8425 = vmatprep.mubr.msk.f32.mxu1 %vm295_vm1, %v6862_v7 }
 0x205   : > { %8376 = vmatmul.mubr.msk.f32.gmra.mrb[24].mxu0 %vm295_vm1, %v6863_v8  ;;  %8426 = vmatmul.mubr.msk.f32.gmra.mrb[24].mxu1 %vm295_vm1, %v6863_v8 }
 0x206   : > { %8378 = vmatprep.mubr.msk.f32.mxu0 %vm295_vm1, %v6864_v35  ;;  %8428 = vmatprep.mubr.msk.f32.mxu1 %vm295_vm1, %v6864_v35 }
 0x209   : > { %8379 = vmatmul.mubr.msk.f32.gmra.mrb[26].mxu0 %vm295_vm1, %v6865_v36  ;;  %8429 = vmatmul.mubr.msk.f32.gmra.mrb[26].mxu1 %vm295_vm1, %v6865_v36 }
 0x20a   : > { %8381 = vmatprep.mubr.msk.f32.mxu0 %vm295_vm1, %v10117_v10  ;;  %8431 = vmatprep.mubr.msk.f32.mxu1 %vm295_vm1, %v10117_v10  ;;  %v6939_v10 = vld [vmem:[%s9128_s6 + $0x3a] sm:$0xff] }
 0x20d   : > { %8382 = vmatmul.mubr.msk.f32.gmra.mrb[28].mxu0 %vm295_vm1, %v10128_v12  ;;  %8432 = vmatmul.mubr.msk.f32.gmra.mrb[28].mxu1 %vm295_vm1, %v10128_v12  ;;  %v6941_v12 = vld [vmem:[%s9128_s6 + $0x52] sm:$0xff]  ;;  %s7042_s6 = sshll.u32 %s10935_s19, 8 }
 0x20e   : > { %8384 = vmatprep.mubr.msk.f32.mxu0 %vm295_vm1, %v6868_v14  ;;  %8434 = vmatprep.mubr.msk.f32.mxu1 %vm295_vm1, %v6868_v14  ;;  %s10771_s21 = scalar_lea.vmem %s10813_s5, %s7042_s6 }
 0x211   : > { %8385 = vmatmul.mubr.msk.f32.gmra.mrb[30].mxu0 %vm295_vm1, %v6869_v15  ;;  %8435 = vmatmul.mubr.msk.f32.gmra.mrb[30].mxu1 %vm295_vm1, %v6869_v15 }
 0x212   : > { %8439 = vmatprep.mubr.msk.f32.mxu0 %vm295_vm1, %v6938_v16  ;;  %8489 = vmatprep.mubr.msk.f32.mxu1 %vm295_vm1, %v6938_v16 }
 0x215   : > { %8440 = vmatmul.mubr.msk.f32.vlgmr.msra.gmra.mrb[0].mxu0 %vm295_vm1, %v6939_v10  ;;  %8490 = vmatmul.mubr.msk.f32.vlgmr.msra.gmra.mrb[0].mxu1 %vm295_vm1, %v6939_v10 }
 0x216   : > { %8442 = vmatprep.mubr.msk.f32.mxu0 %vm295_vm1, %v6940_v17  ;;  %8492 = vmatprep.mubr.msk.f32.mxu1 %vm295_vm1, %v6940_v17 }
 0x219   : > { %8443 = vmatmul.mubr.msk.f32.gmra.mrb[2].mxu0 %vm295_vm1, %v6941_v12  ;;  %8493 = vmatmul.mubr.msk.f32.gmra.mrb[2].mxu1 %vm295_vm1, %v6941_v12 }
 0x21a   : > { %8445 = vmatprep.mubr.msk.f32.mxu0 %vm295_vm1, %v6942_v18  ;;  %8495 = vmatprep.mubr.msk.f32.mxu1 %vm295_vm1, %v6942_v18 }
 0x21d   : > { %8446 = vmatmul.mubr.msk.f32.gmra.mrb[4].mxu0 %vm295_vm1, %v6943_v19  ;;  %8496 = vmatmul.mubr.msk.f32.gmra.mrb[4].mxu1 %vm295_vm1, %v6943_v19 }
 0x21e   : > { %8448 = vmatprep.mubr.msk.f32.mxu0 %vm295_vm1, %v6944_v20  ;;  %8498 = vmatprep.mubr.msk.f32.mxu1 %vm295_vm1, %v6944_v20 }
 0x221   : > { %8449 = vmatmul.mubr.msk.f32.gmra.mrb[6].mxu0 %vm295_vm1, %v6945_v21  ;;  %8499 = vmatmul.mubr.msk.f32.gmra.mrb[6].mxu1 %vm295_vm1, %v6945_v21 }
 0x222   : > { %8451 = vmatprep.mubr.msk.f32.mxu0 %vm295_vm1, %v6946_v22  ;;  %8501 = vmatprep.mubr.msk.f32.mxu1 %vm295_vm1, %v6946_v22 }
 0x225   : > { %8452 = vmatmul.mubr.msk.f32.gmra.mrb[8].mxu0 %vm295_vm1, %v6947_v23  ;;  %8502 = vmatmul.mubr.msk.f32.gmra.mrb[8].mxu1 %vm295_vm1, %v6947_v23 }
 0x226   : > { %8454 = vmatprep.mubr.msk.f32.mxu0 %vm295_vm1, %v6948_v24  ;;  %8504 = vmatprep.mubr.msk.f32.mxu1 %vm295_vm1, %v6948_v24 }
 0x229   : > { %8455 = vmatmul.mubr.msk.f32.gmra.mrb[10].mxu0 %vm295_vm1, %v6949_v25  ;;  %8505 = vmatmul.mubr.msk.f32.gmra.mrb[10].mxu1 %vm295_vm1, %v6949_v25 }
 0x22a   : > { %8457 = vmatprep.mubr.msk.f32.mxu0 %vm295_vm1, %v6950_v26  ;;  %8507 = vmatprep.mubr.msk.f32.mxu1 %vm295_vm1, %v6950_v26 }
 0x22d   : > { %8458 = vmatmul.mubr.msk.f32.gmra.mrb[12].mxu0 %vm295_vm1, %v6951_v27  ;;  %8508 = vmatmul.mubr.msk.f32.gmra.mrb[12].mxu1 %vm295_vm1, %v6951_v27 }
 0x22e   : > { %8460 = vmatprep.mubr.msk.f32.mxu0 %vm295_vm1, %v6952_v28  ;;  %8510 = vmatprep.mubr.msk.f32.mxu1 %vm295_vm1, %v6952_v28 }
 0x231   : > { %8461 = vmatmul.mubr.msk.f32.gmra.mrb[14].mxu0 %vm295_vm1, %v6953_v29  ;;  %8511 = vmatmul.mubr.msk.f32.gmra.mrb[14].mxu1 %vm295_vm1, %v6953_v29 }
 0x232   : > { %8463 = vmatprep.mubr.msk.f32.mxu0 %vm295_vm1, %v6954_v30  ;;  %8513 = vmatprep.mubr.msk.f32.mxu1 %vm295_vm1, %v6954_v30 }
 0x235   : > { %8464 = vmatmul.mubr.msk.f32.gmra.mrb[16].mxu0 %vm295_vm1, %v6955_v31  ;;  %8514 = vmatmul.mubr.msk.f32.gmra.mrb[16].mxu1 %vm295_vm1, %v6955_v31 }
 0x236   : > { %8466 = vmatprep.mubr.msk.f32.mxu0 %vm295_vm1, %v6956_v32  ;;  %8516 = vmatprep.mubr.msk.f32.mxu1 %vm295_vm1, %v6956_v32 }
 0x239   : > { %8467 = vmatmul.mubr.msk.f32.gmra.mrb[18].mxu0 %vm295_vm1, %v6957_v33  ;;  %8517 = vmatmul.mubr.msk.f32.gmra.mrb[18].mxu1 %vm295_vm1, %v6957_v33 }
 0x23a   : > { %8469 = vmatprep.mubr.msk.f32.mxu0 %vm295_vm1, %v6958_v34  ;;  %8519 = vmatprep.mubr.msk.f32.mxu1 %vm295_vm1, %v6958_v34 }
 0x23d   : > { %8470 = vmatmul.mubr.msk.f32.gmra.mrb[20].mxu0 %vm295_vm1, %v6959_v37  ;;  %8520 = vmatmul.mubr.msk.f32.gmra.mrb[20].mxu1 %vm295_vm1, %v6959_v37 }
 0x23e   : > { %8472 = vmatprep.mubr.msk.f32.mxu0 %vm295_vm1, %v6960_v38  ;;  %8522 = vmatprep.mubr.msk.f32.mxu1 %vm295_vm1, %v6960_v38 }
 0x241   : > { %8473 = vmatmul.mubr.msk.f32.gmra.mrb[22].mxu0 %vm295_vm1, %v6961_v40  ;;  %8523 = vmatmul.mubr.msk.f32.gmra.mrb[22].mxu1 %vm295_vm1, %v6961_v40 }
 0x242   : > { %8475 = vmatprep.mubr.msk.f32.mxu0 %vm295_vm1, %v6962_v43  ;;  %8525 = vmatprep.mubr.msk.f32.mxu1 %vm295_vm1, %v6962_v43 }
 0x245   : > { %8476 = vmatmul.mubr.msk.f32.gmra.mrb[24].mxu0 %vm295_vm1, %v6963_v6  ;;  %8526 = vmatmul.mubr.msk.f32.gmra.mrb[24].mxu1 %vm295_vm1, %v6963_v6 }
 0x246   : > { %8478 = vmatprep.mubr.msk.f32.mxu0 %vm295_vm1, %v6964_v9  ;;  %8528 = vmatprep.mubr.msk.f32.mxu1 %vm295_vm1, %v6964_v9 }
 0x249   : > { %8479 = vmatmul.mubr.msk.f32.gmra.mrb[26].mxu0 %vm295_vm1, %v6965_v11  ;;  %8529 = vmatmul.mubr.msk.f32.gmra.mrb[26].mxu1 %vm295_vm1, %v6965_v11 }
 0x24a   : > { %8481 = vmatprep.mubr.msk.f32.mxu0 %vm295_vm1, %v10269_v42  ;;  %8531 = vmatprep.mubr.msk.f32.mxu1 %vm295_vm1, %v10269_v42  ;;  %v10633_v42 = vld [vmem:[%s10811_s3] ss:$0 sm:$0xff] }
 0x24d   : > { %8482 = vmatmul.mubr.msk.f32.gmra.mrb[28].mxu0 %vm295_vm1, %v10280_v39  ;;  %8532 = vmatmul.mubr.msk.f32.gmra.mrb[28].mxu1 %vm295_vm1, %v10280_v39 }
 0x24e   : > { %8484 = vmatprep.mubr.msk.f32.mxu0 %vm295_vm1, %v6968_v41  ;;  %8534 = vmatprep.mubr.msk.f32.mxu1 %vm295_vm1, %v6968_v41 }
 0x251   : > { %8485 = vmatmul.mubr.msk.f32.gmra.mrb[30].mxu0 %vm295_vm1, %v6969_v13  ;;  %8535 = vmatmul.mubr.msk.f32.gmra.mrb[30].mxu1 %vm295_vm1, %v6969_v13 }
 0x2e8   : > { %v8441_v39 = vpop.f32.mrb[0].mxu0  ;;  %v8491_v45 = vpop.f32.mrb[0].mxu1 }
 0x2e9   : > { %v5975_v46 = vadd.f32 %v8441_v39, %v10633_v42  ;;  %v6014_v47 = vadd.f32 %v8491_v45, %v10638_v44  ;;  %v5516_v48 = vpop.f32.mrb[1].mxu0  ;;  %v5776_v49 = vpop.f32.mrb[1].mxu1 }
 0x2ea   : > { %v5974_v50 = vadd.f32 %v10633_v42, %v5516_v48  ;;  %v6013_v51 = vadd.f32 %v10638_v44, %v5776_v49 }
 0x2eb   : > { %v6046_v52 = vmax.f32 %v5975_v46, %v6014_v47 }
 0x2ec   : > { %v8444_v53 = vpop.f32.mrb[2].mxu0  ;;  %v8494_v54 = vpop.f32.mrb[2].mxu1  ;;  %v6045_v55 = vmax.f32 %v5974_v50, %v6013_v51 }
 0x2ed   : > { %v5977_v56 = vadd.f32 %v8444_v53, %v10633_v42  ;;  %v6016_v57 = vadd.f32 %v8494_v54, %v10638_v44  ;;  %v5526_v58 = vpop.f32.mrb[3].mxu0  ;;  %v5786_v59 = vpop.f32.mrb[3].mxu1 }
 0x2ee   : > { %v5976_v60 = vadd.f32 %v10633_v42, %v5526_v58  ;;  %v6015_v61 = vadd.f32 %v10638_v44, %v5786_v59  ;;  %6077 = vxpose.xlu0.b32.start [1/16] %v6045_v55, 128 }
 0x2ef   : > { %v6048_v62 = vmax.f32 %v5977_v56, %v6016_v57 }
 0x2f0   : > { %v8447_v63 = vpop.f32.mrb[4].mxu0  ;;  %v8497_v0 = vpop.f32.mrb[4].mxu1  ;;  %v6047_v1 = vmax.f32 %v5976_v60, %v6015_v61 }
 0x2f1   : > { %v5979_v2 = vadd.f32 %v8447_v63, %v10633_v42  ;;  %v6018_v3 = vadd.f32 %v8497_v0, %v10638_v44  ;;  %v5536_v4 = vpop.f32.mrb[5].mxu0  ;;  %v5796_v5 = vpop.f32.mrb[5].mxu1 }
 0x2f2   : > { %v5978_v7 = vadd.f32 %v10633_v42, %v5536_v4  ;;  %v6017_v8 = vadd.f32 %v10638_v44, %v5796_v5  ;;  %6078 = vxpose.xlu0.b32.cont [2/16] %v6046_v52, 128 }
 0x2f3   : > { %v6050_v35 = vmax.f32 %v5979_v2, %v6018_v3 }
 0x2f4   : > { %v8450_v36 = vpop.f32.mrb[6].mxu0  ;;  %v8500_v14 = vpop.f32.mrb[6].mxu1  ;;  %v6049_v15 = vmax.f32 %v5978_v7, %v6017_v8 }
 0x2f5   : > { %v5981_v16 = vadd.f32 %v8450_v36, %v10633_v42  ;;  %v6020_v10 = vadd.f32 %v8500_v14, %v10638_v44  ;;  %v5546_v17 = vpop.f32.mrb[7].mxu0  ;;  %v5806_v12 = vpop.f32.mrb[7].mxu1 }
 0x2f6   : > { %v5980_v18 = vadd.f32 %v10633_v42, %v5546_v17  ;;  %v6019_v19 = vadd.f32 %v10638_v44, %v5806_v12  ;;  %6079 = vxpose.xlu0.b32.cont [3/16] %v6047_v1, 128 }
 0x2f7   : > { %v6052_v20 = vmax.f32 %v5981_v16, %v6020_v10 }
 0x2f8   : > { %v8453_v21 = vpop.f32.mrb[8].mxu0  ;;  %v8503_v22 = vpop.f32.mrb[8].mxu1  ;;  %v6051_v23 = vmax.f32 %v5980_v18, %v6019_v19 }
 0x2f9   : > { %v10657_v24 = vadd.f32 %v8453_v21, %v10633_v42  ;;  %v10660_v25 = vadd.f32 %v8503_v22, %v10638_v44  ;;  %v5556_v26 = vpop.f32.mrb[9].mxu0  ;;  %v5816_v27 = vpop.f32.mrb[9].mxu1 }
 0x2fa   : > { %v5982_v28 = vadd.f32 %v10633_v42, %v5556_v26  ;;  %v6021_v29 = vadd.f32 %v10638_v44, %v5816_v27  ;;  %6080 = vxpose.xlu0.b32.cont [4/16] %v6048_v62, 128 }
 0x2fb   : > { %v6054_v30 = vmax.f32 %v10657_v24, %v10660_v25 }
 0x2fc   : > { %v8456_v31 = vpop.f32.mrb[10].mxu0  ;;  %v8506_v32 = vpop.f32.mrb[10].mxu1  ;;  %v6053_v33 = vmax.f32 %v5982_v28, %v6021_v29 }
 0x2fd   : > { %v10667_v34 = vadd.f32 %v8456_v31, %v10633_v42  ;;  %v10670_v37 = vadd.f32 %v8506_v32, %v10638_v44  ;;  %v5566_v38 = vpop.f32.mrb[11].mxu0  ;;  %v5826_v40 = vpop.f32.mrb[11].mxu1 }
 0x2fe   : > { %v10673_v43 = vadd.f32 %v10633_v42, %v5566_v38  ;;  %v10676_v6 = vadd.f32 %v10638_v44, %v5826_v40  ;;  %6081 = vxpose.xlu0.b32.cont [5/16] %v6049_v15, 128 }
 0x2ff   : > { %v6056_v9 = vmax.f32 %v10667_v34, %v10670_v37 }
 0x300   : > { %v8459_v11 = vpop.f32.mrb[12].mxu0  ;;  %v8509_v41 = vpop.f32.mrb[12].mxu1  ;;  %v6055_v13 = vmax.f32 %v10673_v43, %v10676_v6 }
 0x301   : > { %v10683_v39 = vadd.f32 %v8459_v11, %v10633_v42  ;;  %v10686_v45 = vadd.f32 %v8509_v41, %v10638_v44  ;;  %v5576_v46 = vpop.f32.mrb[13].mxu0  ;;  %v5836_v47 = vpop.f32.mrb[13].mxu1 }
 0x302   : > { %v10689_v48 = vadd.f32 %v10633_v42, %v5576_v46  ;;  %v10692_v49 = vadd.f32 %v10638_v44, %v5836_v47  ;;  %6082 = vxpose.xlu0.b32.cont [6/16] %v6050_v35, 128 }
 0x303   : > { %v6058_v50 = vmax.f32 %v10683_v39, %v10686_v45 }
 0x304   : > { %v8462_v51 = vpop.f32.mrb[14].mxu0  ;;  %v8512_v52 = vpop.f32.mrb[14].mxu1  ;;  %v6057_v53 = vmax.f32 %v10689_v48, %v10692_v49 }
 0x305   : > { %v10699_v54 = vadd.f32 %v8462_v51, %v10633_v42  ;;  %v10702_v55 = vadd.f32 %v8512_v52, %v10638_v44  ;;  %v5586_v56 = vpop.f32.mrb[15].mxu0  ;;  %v5846_v57 = vpop.f32.mrb[15].mxu1 }
 0x306   : > { %v10705_v58 = vadd.f32 %v10633_v42, %v5586_v56  ;;  %v10708_v59 = vadd.f32 %v10638_v44, %v5846_v57  ;;  %6083 = vxpose.xlu0.b32.cont [7/16] %v6051_v23, 128 }
 0x307   : > { %v6060_v60 = vmax.f32 %v10699_v54, %v10702_v55 }
 0x308   : > { %v8465_v61 = vpop.f32.mrb[16].mxu0  ;;  %v8515_v62 = vpop.f32.mrb[16].mxu1  ;;  %v6059_v63 = vmax.f32 %v10705_v58, %v10708_v59 }
 0x309   : > { %v5991_v0 = vadd.f32 %v8465_v61, %v10633_v42  ;;  %v6030_v1 = vadd.f32 %v8515_v62, %v10638_v44  ;;  %v5596_v2 = vpop.f32.mrb[17].mxu0  ;;  %v5856_v3 = vpop.f32.mrb[17].mxu1 }
 0x30a   : > { %v5990_v4 = vadd.f32 %v10633_v42, %v5596_v2  ;;  %v6029_v5 = vadd.f32 %v10638_v44, %v5856_v3  ;;  %6084 = vxpose.xlu0.b32.cont [8/16] %v6052_v20, 128 }
 0x30b   : > { %v6062_v7 = vmax.f32 %v5991_v0, %v6030_v1 }
 0x30c   : > { %v8468_v8 = vpop.f32.mrb[18].mxu0  ;;  %v8518_v35 = vpop.f32.mrb[18].mxu1  ;;  %v6061_v36 = vmax.f32 %v5990_v4, %v6029_v5 }
 0x30d   : > { %v5993_v14 = vadd.f32 %v8468_v8, %v10633_v42  ;;  %v6032_v15 = vadd.f32 %v8518_v35, %v10638_v44  ;;  %v5606_v16 = vpop.f32.mrb[19].mxu0  ;;  %v5866_v10 = vpop.f32.mrb[19].mxu1 }
 0x30e   : > { %v5992_v17 = vadd.f32 %v10633_v42, %v5606_v16  ;;  %v6031_v12 = vadd.f32 %v10638_v44, %v5866_v10  ;;  %6085 = vxpose.xlu0.b32.cont [9/16] %v6053_v33, 128  ;;  %6109 = vxpose.xlu1.b32.start [1/16] %v6061_v36, 128 }
 0x30f   : > { %v6064_v18 = vmax.f32 %v5993_v14, %v6032_v15 }
 0x310   : > { %v8471_v19 = vpop.f32.mrb[20].mxu0  ;;  %v8521_v21 = vpop.f32.mrb[20].mxu1  ;;  %v6063_v20 = vmax.f32 %v5992_v17, %v6031_v12 }
 0x311   : > { %v5995_v22 = vadd.f32 %v8471_v19, %v10633_v42  ;;  %v6034_v23 = vadd.f32 %v8521_v21, %v10638_v44  ;;  %v5616_v26 = vpop.f32.mrb[21].mxu0  ;;  %v5876_v27 = vpop.f32.mrb[21].mxu1 }
 0x312   : > { %v5994_v28 = vadd.f32 %v10633_v42, %v5616_v26  ;;  %v6033_v29 = vadd.f32 %v10638_v44, %v5876_v27  ;;  %6086 = vxpose.xlu0.b32.cont [10/16] %v6054_v30, 128  ;;  %6110 = vxpose.xlu1.b32.cont [2/16] %v6062_v7, 128 }
 0x313   : > { %v6066_v31 = vmax.f32 %v5995_v22, %v6034_v23 }
 0x314   : > { %v8474_v32 = vpop.f32.mrb[22].mxu0  ;;  %v8524_v33 = vpop.f32.mrb[22].mxu1  ;;  %v6065_v38 = vmax.f32 %v5994_v28, %v6033_v29 }
 0x315   : > { %v5997_v40 = vadd.f32 %v8474_v32, %v10633_v42  ;;  %v6036_v11 = vadd.f32 %v8524_v33, %v10638_v44  ;;  %v5626_v41 = vpop.f32.mrb[23].mxu0  ;;  %v5886_v46 = vpop.f32.mrb[23].mxu1 }
 0x316   : > { %v5996_v47 = vadd.f32 %v10633_v42, %v5626_v41  ;;  %v6035_v51 = vadd.f32 %v10638_v44, %v5886_v46  ;;  %6087 = vxpose.xlu0.b32.cont [11/16] %v6055_v13, 128  ;;  %6111 = vxpose.xlu1.b32.cont [3/16] %v6063_v20, 128 }
 0x317   : > { %v6068_v24 = vmax.f32 %v5997_v40, %v6036_v11 }
 0x318   : > { %v8477_v25 = vpop.f32.mrb[24].mxu0  ;;  %v8527_v30 = vpop.f32.mrb[24].mxu1  ;;  %v6067_v52 = vmax.f32 %v5996_v47, %v6035_v51 }
 0x319   : > { %v5999_v56 = vadd.f32 %v8477_v25, %v10633_v42  ;;  %v6038_v57 = vadd.f32 %v8527_v30, %v10638_v44  ;;  %v5636_v61 = vpop.f32.mrb[25].mxu0  ;;  %v5896_v62 = vpop.f32.mrb[25].mxu1 }
 0x31a   : > { %v5998_v0 = vadd.f32 %v10633_v42, %v5636_v61  ;;  %v6037_v1 = vadd.f32 %v10638_v44, %v5896_v62  ;;  %6088 = vxpose.xlu0.b32.cont [12/16] %v6056_v9, 128  ;;  %6112 = vxpose.xlu1.b32.cont [4/16] %v6064_v18, 128 }
 0x31b   : > { %v6070_v43 = vmax.f32 %v5999_v56, %v6038_v57 }
 0x31c   : > { %v8480_v6 = vpop.f32.mrb[26].mxu0  ;;  %v8530_v13 = vpop.f32.mrb[26].mxu1  ;;  %v6069_v2 = vmax.f32 %v5998_v0, %v6037_v1 }
 0x31d   : > { %v6001_v3 = vadd.f32 %v8480_v6, %v10633_v42  ;;  %v6040_v4 = vadd.f32 %v8530_v13, %v10638_v44  ;;  %v5646_v5 = vpop.f32.mrb[27].mxu0  ;;  %v5906_v7 = vpop.f32.mrb[27].mxu1 }
 0x31e   : > { %v6000_v8 = vadd.f32 %v10633_v42, %v5646_v5  ;;  %v6039_v35 = vadd.f32 %v10638_v44, %v5906_v7  ;;  %6089 = vxpose.xlu0.b32.cont [13/16] %v6057_v53, 128  ;;  %6113 = vxpose.xlu1.b32.cont [5/16] %v6065_v38, 128 }
 0x31f   : > { %v6072_v34 = vmax.f32 %v6001_v3, %v6040_v4 }
 0x320   : > { %v8483_v37 = vpop.f32.mrb[28].mxu0  ;;  %v8533_v9 = vpop.f32.mrb[28].mxu1  ;;  %v6071_v36 = vmax.f32 %v6000_v8, %v6039_v35 }
 0x321   : > { %v6003_v14 = vadd.f32 %v8483_v37, %v10633_v42  ;;  %v6042_v15 = vadd.f32 %v8533_v9, %v10638_v44  ;;  %v5656_v16 = vpop.f32.mrb[29].mxu0  ;;  %v5916_v10 = vpop.f32.mrb[29].mxu1 }
 0x322   : > { %v6002_v17 = vadd.f32 %v10633_v42, %v5656_v16  ;;  %v6041_v12 = vadd.f32 %v10638_v44, %v5916_v10  ;;  %6090 = vxpose.xlu0.b32.cont [14/16] %v6058_v50, 128  ;;  %6114 = vxpose.xlu1.b32.cont [6/16] %v6066_v31, 128 }
 0x323   : > { %v6074_v48 = vmax.f32 %v6003_v14, %v6042_v15 }
 0x324   : > { %v8486_v49 = vpop.f32.mrb[30].mxu0  ;;  %v8536_v53 = vpop.f32.mrb[30].mxu1  ;;  %v6073_v18 = vmax.f32 %v6002_v17, %v6041_v12 }
 0x325   : > { %v6005_v19 = vadd.f32 %v8486_v49, %v10633_v42  ;;  %v6044_v21 = vadd.f32 %v8536_v53, %v10638_v44  ;;  %v5666_v20 = vpop.f32.mrb[31].mxu0  ;;  %v5926_v22 = vpop.f32.mrb[31].mxu1 }
 0x326   : > { %v6004_v23 = vadd.f32 %v10633_v42, %v5666_v20  ;;  %v6043_v26 = vadd.f32 %v10638_v44, %v5926_v22  ;;  %6091 = vxpose.xlu0.b32.cont [15/16] %v6059_v63, 128  ;;  %6115 = vxpose.xlu1.b32.cont [7/16] %v6067_v52, 128 }
 0x327   : > { %v6076_v39 = vmax.f32 %v6005_v19, %v6044_v21 }
 0x328   : > { %v6075_v45 = vmax.f32 %v6004_v23, %v6043_v26 }
 0x32a   : > { %6092 = vxpose.xlu0.b32.end [16/16] %v6060_v60, 128  ;;  %6116 = vxpose.xlu1.b32.cont [8/16] %v6068_v24, 128 }
 0x32e   : > { %6117 = vxpose.xlu1.b32.cont [9/16] %v6069_v2, 128 }
 0x332   : > { %6118 = vxpose.xlu1.b32.cont [10/16] %v6070_v43, 128 }
 0x336   : > { %6119 = vxpose.xlu1.b32.cont [11/16] %v6071_v36, 128 }
 0x33a   : > { %6120 = vxpose.xlu1.b32.cont [12/16] %v6072_v34, 128 }
 0x33e   : > { %6121 = vxpose.xlu1.b32.cont [13/16] %v6073_v18, 128 }
 0x342   : > { %6122 = vxpose.xlu1.b32.cont [14/16] %v6074_v48, 128 }
 0x346   : > { %6123 = vxpose.xlu1.b32.cont [15/16] %v6075_v45, 128 }
 0x34a   : > { %6124 = vxpose.xlu1.b32.end [16/16] %v6076_v39, 128 }
 0x36e   : > { %v6093_v42 = vpop.trf.xlu0 }
 0x36f   : > { %6141 = vst [vmem:[%s10771_s21] sm:$0xff] %v6093_v42 }
 0x372   : > { %v6094_v44 = vpop.trf.xlu0 }
 0x373   : > { %6143 = vst [vmem:[%s10771_s21 + $0x10] sm:$0xff] %v6094_v44 }
 0x376   : > { %v6095_v50 = vpop.trf.xlu0 }
 0x377   : > { %6145 = vst [vmem:[%s10771_s21 + $0x20] sm:$0xff] %v6095_v50 }
 0x37a   : > { %v6096_v54 = vpop.trf.xlu0 }
 0x37b   : > { %6147 = vst [vmem:[%s10771_s21 + $0x30] sm:$0xff] %v6096_v54 }
 0x37e   : > { %v6097_v55 = vpop.trf.xlu0 }
 0x37f   : > { %6149 = vst [vmem:[%s10771_s21 + $0x40] sm:$0xff] %v6097_v55 }
 0x382   : > { %v6098_v58 = vpop.trf.xlu0 }
 0x383   : > { %6151 = vst [vmem:[%s10771_s21 + $0x50] sm:$0xff] %v6098_v58 }
 0x386   : > { %v6099_v59 = vpop.trf.xlu0 }
 0x387   : > { %6153 = vst [vmem:[%s10771_s21 + $0x60] sm:$0xff] %v6099_v59 }
 0x38a   : > { %v6100_v60 = vpop.trf.xlu0 }
 0x38b   : > { %6155 = vst [vmem:[%s10771_s21 + $0x70] sm:$0xff] %v6100_v60 }
 0x38e   : > { %v6125_v63 = vpop.trf.xlu1  ;;  %v6101_v27 = vpop.trf.xlu0 }
 0x38f   : > { %6142 = vst [vmem:[%s10771_s21 + $0x8] sm:$0xff] %v6125_v63  ;;  %6157 = vst [vmem:[%s10771_s21 + $0x80] sm:$0xff] %v6101_v27 }
 0x392   : > { %v6126_v28 = vpop.trf.xlu1  ;;  %v6102_v29 = vpop.trf.xlu0 }
 0x393   : > { %6144 = vst [vmem:[%s10771_s21 + $0x18] sm:$0xff] %v6126_v28  ;;  %6159 = vst [vmem:[%s10771_s21 + $0x90] sm:$0xff] %v6102_v29 }
 0x396   : > { %v6127_v31 = vpop.trf.xlu1  ;;  %v6103_v32 = vpop.trf.xlu0 }
 0x397   : > { %6146 = vst [vmem:[%s10771_s21 + $0x28] sm:$0xff] %v6127_v31  ;;  %6161 = vst [vmem:[%s10771_s21 + $0xa0] sm:$0xff] %v6103_v32 }
 0x39a   : > { %v6128_v33 = vpop.trf.xlu1  ;;  %v6104_v38 = vpop.trf.xlu0 }
 0x39b   : > { %6148 = vst [vmem:[%s10771_s21 + $0x38] sm:$0xff] %v6128_v33  ;;  %6163 = vst [vmem:[%s10771_s21 + $0xb0] sm:$0xff] %v6104_v38 }
 0x39e   : > { %v6129_v40 = vpop.trf.xlu1  ;;  %v6105_v11 = vpop.trf.xlu0 }
 0x39f   : > { %6150 = vst [vmem:[%s10771_s21 + $0x48] sm:$0xff] %v6129_v40  ;;  %6165 = vst [vmem:[%s10771_s21 + $0xc0] sm:$0xff] %v6105_v11 }
 0x3a2   : > { %v6130_v41 = vpop.trf.xlu1  ;;  %v6106_v46 = vpop.trf.xlu0 }
 0x3a3   : > { %6152 = vst [vmem:[%s10771_s21 + $0x58] sm:$0xff] %v6130_v41  ;;  %6167 = vst [vmem:[%s10771_s21 + $0xd0] sm:$0xff] %v6106_v46 }
 0x3a6   : > { %v6131_v47 = vpop.trf.xlu1  ;;  %v6107_v51 = vpop.trf.xlu0 }
 0x3a7   : > { %6154 = vst [vmem:[%s10771_s21 + $0x68] sm:$0xff] %v6131_v47  ;;  %6169 = vst [vmem:[%s10771_s21 + $0xe0] sm:$0xff] %v6107_v51 }
 0x3aa   : > { %v6132_v24 = vpop.trf.xlu1  ;;  %v6108_v25 = vpop.trf.xlu0 }
 0x3ab   : > { %6156 = vst [vmem:[%s10771_s21 + $0x78] sm:$0xff] %v6132_v24  ;;  %6171 = vst [vmem:[%s10771_s21 + $0xf0] sm:$0xff] %v6108_v25 }
 0x3ae   : > { %v6133_v30 = vpop.trf.xlu1 }
 0x3af   : > { %6158 = vst [vmem:[%s10771_s21 + $0x88] sm:$0xff] %v6133_v30 }
 0x3b2   : > { %v6134_v52 = vpop.trf.xlu1 }
 0x3b3   : > { %6160 = vst [vmem:[%s10771_s21 + $0x98] sm:$0xff] %v6134_v52 }
 0x3b6   : > { %v6135_v56 = vpop.trf.xlu1 }
 0x3b7   : > { %6162 = vst [vmem:[%s10771_s21 + $0xa8] sm:$0xff] %v6135_v56 }
 0x3ba   : > { %v6136_v57 = vpop.trf.xlu1 }
 0x3bb   : > { %6164 = vst [vmem:[%s10771_s21 + $0xb8] sm:$0xff] %v6136_v57 }
 0x3be   : > { %v6137_v61 = vpop.trf.xlu1 }
 0x3bf   : > { %6166 = vst [vmem:[%s10771_s21 + $0xc8] sm:$0xff] %v6137_v61 }
 0x3c2   : > { %v6138_v62 = vpop.trf.xlu1 }
 0x3c3   : > { %6168 = vst [vmem:[%s10771_s21 + $0xd8] sm:$0xff] %v6138_v62 }
 0x3c6   : > { %v6139_v0 = vpop.trf.xlu1 }
 0x3c7   : > { %6170 = vst [vmem:[%s10771_s21 + $0xe8] sm:$0xff] %v6139_v0 }
 0x3ca   : > { %v6140_v1 = vpop.trf.xlu1 }
 0x3cb   : > { %6172 = vst [vmem:[%s10771_s21 + $0xf8] sm:$0xff] %v6140_v1 }
 0x3cc PF: > { %s15_s18 = sadd.s32 1, %s9064_s18  }
 0x3cd   : > { %p12_p4 = scmp.ge.s32.totalorder %s15_s18, 4  }
 0x3cf   :  { %14 = sbr.rel (!%p12_p4) target bundleno = 1 (0x1), region = 88 }

</bundles_post_ra>
